<compile_context>
chip_gen: v7x
topology: tpu7x:2x2x1
jax: 0.10.0
libtpu: 0.0.40
codegen_flags: <defaults>
</compile_context>

<pallas_src>
import numpy as np
import jax
import jax.numpy as jnp
from jax.experimental import pallas as pl
from jax.experimental.pallas import tpu as pltpu


# ------------------------------ fused Pallas kernel ------------------------------

def _net_kernel(x_ref, w1_ref, b1_ref, tw1_ref, sh1_ref,
                w2_ref, b2_ref, tw2_ref, sh2_ref,
                wf1_ref, fb1_ref, wf2_ref, fb2_ref, wf3_ref, fb3_ref,
                o_ref, p1_ref, p2_ref):
    f32 = jnp.float32

    # ---- conv1 (3->6, 5x5) as 5 banded matmuls over kernel rows, + bias + ReLU
    # x_ref: (32, 96)  cols = w*3 + cin ;  h1: (28, 168)  cols = ow*6 + cout
    h1 = jnp.dot(x_ref[0:28, :], w1_ref[0], preferred_element_type=f32)
    for i in range(1, 5):
        h1 = h1 + jnp.dot(x_ref[i:i + 28, :], w1_ref[i], preferred_element_type=f32)
    h1 = jnp.maximum(h1 + b1_ref[...], 0.0)

    # ---- maxpool 2x2/2 via 0/1 column/row selection matmuls + elementwise max
    a1 = jnp.maximum(jnp.dot(h1, tw1_ref[0], preferred_element_type=f32),
                     jnp.dot(h1, tw1_ref[1], preferred_element_type=f32))      # (28, 84)
    p1_ref[...] = jnp.maximum(jnp.dot(sh1_ref[0], a1, preferred_element_type=f32),
                              jnp.dot(sh1_ref[1], a1, preferred_element_type=f32))  # (14, 84)

    # ---- conv2 (6->16, 5x5) + bias + ReLU ; h2: (10, 160)  cols = ow*16 + cout
    h2 = jnp.dot(p1_ref[0:10, :], w2_ref[0], preferred_element_type=f32)
    for i in range(1, 5):
        h2 = h2 + jnp.dot(p1_ref[i:i + 10, :], w2_ref[i], preferred_element_type=f32)
    h2 = jnp.maximum(h2 + b2_ref[...], 0.0)

    # ---- maxpool 2x2/2
    a2 = jnp.maximum(jnp.dot(h2, tw2_ref[0], preferred_element_type=f32),
                     jnp.dot(h2, tw2_ref[1], preferred_element_type=f32))      # (10, 80)
    p2_ref[...] = jnp.maximum(jnp.dot(sh2_ref[0], a2, preferred_element_type=f32),
                              jnp.dot(sh2_ref[1], a2, preferred_element_type=f32))   # (5, 80)

    # ---- fc1 (torch.flatten permutation absorbed into wf1 layout) + ReLU
    z = jnp.dot(p2_ref[0:1, :], wf1_ref[0], preferred_element_type=f32)
    for h in range(1, 5):
        z = z + jnp.dot(p2_ref[h:h + 1, :], wf1_ref[h], preferred_element_type=f32)
    z = jnp.maximum(z + fb1_ref[...], 0.0)                                     # (1, 120)

    # ---- fc2 + ReLU, fc3 + log_softmax
    z = jnp.maximum(jnp.dot(z, wf2_ref[...], preferred_element_type=f32) + fb2_ref[...], 0.0)
    z = jnp.dot(z, wf3_ref[...], preferred_element_type=f32) + fb3_ref[...]    # (1, 10)

    m = jnp.max(z, axis=-1, keepdims=True)
    lse = jnp.log(jnp.sum(jnp.exp(z - m), axis=-1, keepdims=True)) + m
    o_ref[0] = z - lse


# ------------------------------ forward wrapper ------------------------------

@jax.jit
def net_forward(x_nchw, packed):
    N = x_nchw.shape[0]
    # NCHW -> NHWC -> per-image 2D tile of shape (32, 96) with cols = w*3 + c
    x2 = jnp.transpose(x_nchw.astype(jnp.float32), (0, 2, 3, 1)).reshape(N * 32, 96)

    def const_spec(a):
        zeros = (0,) * a.ndim
        return pl.BlockSpec(a.shape, lambda i, _z=zeros: _z)

    in_specs = [pl.BlockSpec((32, 96), lambda i: (i, 0))] + [const_spec(a) for a in packed]

    out = pl.pallas_call(
        _net_kernel,
        grid=(N,),
        out_shape=jax.ShapeDtypeStruct((N, 1, 10), jnp.float32),
        in_specs=in_specs,
        out_specs=pl.BlockSpec((1, 1, 10), lambda i: (i, 0, 0)),
        scratch_shapes=[pltpu.VMEM((14, 84), jnp.float32),   # pooled conv1 map
                        pltpu.VMEM((5, 80), jnp.float32)],   # pooled conv2 map
        compiler_params=pltpu.CompilerParams(
            dimension_semantics=("parallel",)),
    )(x2, *packed)
    return out.reshape(N, 10)


# ------------------------------ parameter setup ------------------------------

def spectral_normalize(w, n_iter=30):
    # eval-mode nn.utils.spectral_norm: divide by top singular value of w.reshape(out, -1)
    w2d = w.reshape(w.shape[0], -1).astype(jnp.float32)
    v = jnp.ones((w2d.shape[1],), jnp.float32)
    for _ in range(n_iter):
        u = w2d @ v
        u = u / (jnp.linalg.norm(u) + 1e-12)
        v = w2d.T @ u
        v = v / (jnp.linalg.norm(v) + 1e-12)
    sigma = u @ (w2d @ v)
    return w / sigma


def init_params(key):
    ks = jax.random.split(key, 10)
    cw1 = spectral_normalize(jax.random.normal(ks[0], (6, 3, 5, 5), jnp.float32) * 0.1)
    cb1 = jax.random.normal(ks[1], (6,), jnp.float32) * 0.1
    cw2 = spectral_normalize(jax.random.normal(ks[2], (16, 6, 5, 5), jnp.float32) * 0.1)
    cb2 = jax.random.normal(ks[3], (16,), jnp.float32) * 0.1
    fw1 = spectral_normalize(jax.random.normal(ks[4], (120, 400), jnp.float32) * 0.05)
    fb1 = jax.random.normal(ks[5], (120,), jnp.float32) * 0.05
    fw2 = spectral_normalize(jax.random.normal(ks[6], (84, 120), jnp.float32) * 0.05)
    fb2 = jax.random.normal(ks[7], (84,), jnp.float32) * 0.05
    fw3 = spectral_normalize(jax.random.normal(ks[8], (10, 84), jnp.float32) * 0.05)
    fb3 = jax.random.normal(ks[9], (10,), jnp.float32) * 0.05
    return (cw1, cb1, cw2, cb2, fw1, fb1, fw2, fb2, fw3, fb3)


def pack_params(params):
    """Build (once, at init) the banded conv weights, pooling selection matrices and
    permuted FC weights consumed by the fused kernel."""
    cw1, cb1, cw2, cb2, fw1, fb1, fw2, fb2, fw3, fb3 = [np.asarray(p, np.float32) for p in params]

    # conv1 banded weights: W1[i, (ow+j)*3+ci, ow*6+co] = cw1[co, ci, i, j]
    W1 = np.zeros((5, 96, 28 * 6), np.float32)
    for i in range(5):
        for ow in range(28):
            for j in range(5):
                W1[i, (ow + j) * 3:(ow + j) * 3 + 3, ow * 6:ow * 6 + 6] = cw1[:, :, i, j].T
    b1t = np.tile(cb1, 28)[None, :]                                   # (1, 168)

    # pool1 selectors: columns (w-pairs) and rows (h-pairs)
    Tw1 = np.zeros((2, 168, 84), np.float32)
    for pw in range(14):
        for c in range(6):
            Tw1[0, (2 * pw) * 6 + c, pw * 6 + c] = 1.0
            Tw1[1, (2 * pw + 1) * 6 + c, pw * 6 + c] = 1.0
    Sh1 = np.zeros((2, 14, 28), np.float32)
    for ph in range(14):
        Sh1[0, ph, 2 * ph] = 1.0
        Sh1[1, ph, 2 * ph + 1] = 1.0

    # conv2 banded weights: W2[i, (ow+j)*6+ci, ow*16+co] = cw2[co, ci, i, j]
    W2 = np.zeros((5, 84, 10 * 16), np.float32)
    for i in range(5):
        for ow in range(10):
            for j in range(5):
                W2[i, (ow + j) * 6:(ow + j) * 6 + 6, ow * 16:ow * 16 + 16] = cw2[:, :, i, j].T
    b2t = np.tile(cb2, 10)[None, :]                                   # (1, 160)

    # pool2 selectors
    Tw2 = np.zeros((2, 160, 80), np.float32)
    for pw in range(5):
        for c in range(16):
            Tw2[0, (2 * pw) * 16 + c, pw * 16 + c] = 1.0
            Tw2[1, (2 * pw + 1) * 16 + c, pw * 16 + c] = 1.0
    Sh2 = np.zeros((2, 5, 10), np.float32)
    for ph in range(5):
        Sh2[0, ph, 2 * ph] = 1.0
        Sh2[1, ph, 2 * ph + 1] = 1.0

    # fc1 split by pooled row h; absorbs torch.flatten(NCHW) index c*25 + h*5 + w and the
    # kernel's pooled layout (rows = h, cols = w*16 + c):  Wf1[h, w*16+c, d] = fw1[d, c*25+h*5+w]
    Wf1 = np.zeros((5, 80, 120), np.float32)
    for h in range(5):
        for w in range(5):
            for c in range(16):
                Wf1[h, w * 16 + c, :] = fw1[:, c * 25 + h * 5 + w]
    fb1r = fb1[None, :]
    Wf2 = np.ascontiguousarray(fw2.T)                                  # (120, 84)
    fb2r = fb2[None, :]
    Wf3 = np.ascontiguousarray(fw3.T)                                  # (84, 10)
    fb3r = fb3[None, :]

    packed = (W1, b1t, Tw1, Sh1, W2, b2t, Tw2, Sh2, Wf1, fb1r, Wf2, fb2r, Wf3, fb3r)
    return tuple(jnp.asarray(p) for p in packed)


# ------------------------------ pure-JAX reference ------------------------------

def ref_forward(x_nchw, params):
    (cw1, cb1, cw2, cb2, fw1, fb1, fw2, fb2, fw3, fb3) = params
    dn = ('NCHW', 'OIHW', 'NCHW')

    def pool(y):
        return jax.lax.reduce_window(y, -jnp.inf, jax.lax.max,
                                     (1, 1, 2, 2), (1, 1, 2, 2), 'VALID')

    y = jax.lax.conv_general_dilated(x_nchw, cw1, (1, 1), 'VALID', dimension_numbers=dn)
    y = pool(jnp.maximum(y + cb1[None, :, None, None], 0.0))
    y = jax.lax.conv_general_dilated(y, cw2, (1, 1), 'VALID', dimension_numbers=dn)
    y = pool(jnp.maximum(y + cb2[None, :, None, None], 0.0))
    y = y.reshape(y.shape[0], -1)
    y = jnp.maximum(y @ fw1.T + fb1, 0.0)
    y = jnp.maximum(y @ fw2.T + fb2, 0.0)
    y = y @ fw3.T + fb3
    return jax.nn.log_softmax(y, axis=1)


# ----------------------------------- main ------------------------------------

if __name__ == "__main__":
    key = jax.random.PRNGKey(0)
    pkey, xkey = jax.random.split(key)
    params = init_params(pkey)
    packed = pack_params(params)          # all weight preprocessing hoisted out of the hot path

    # Input implied by the module: CIFAR-like 3x32x32 images (small batch=2).
    x = jax.random.normal(xkey, (2, 3, 32, 32), jnp.float32)

    out = jax.block_until_ready(net_forward(x, packed))
    ref = jax.block_until_ready(ref_forward(x, params))

    assert out.shape == (2, 10), out.shape
    # Tolerance covers MXU default-precision differences between the fused Pallas path
    # (all layers as MXU matmuls) and the XLA conv/reduce_window reference path.
    max_err = float(jnp.max(jnp.abs(out - ref)))
    assert jnp.allclose(out, ref, atol=2e-2, rtol=2e-2), max_err
    # log_softmax rows should sum to 1 in probability space
    assert jnp.allclose(jnp.sum(jnp.exp(out), axis=1), 1.0, atol=1e-3)

    print("KERNEL_OK")
</pallas_src>

<mosaic_0001>
module attributes {stable_mosaic.version = 11 : i64} {
  func.func @_net_kernel(%arg0: i32, %arg1: memref<32x96xf32, #tpu.memory_space<vmem>>, %arg2: memref<5x96x168xf32, #tpu.memory_space<vmem>>, %arg3: memref<1x168xf32, #tpu.memory_space<vmem>>, %arg4: memref<2x168x84xf32, #tpu.memory_space<vmem>>, %arg5: memref<2x14x28xf32, #tpu.memory_space<vmem>>, %arg6: memref<5x84x160xf32, #tpu.memory_space<vmem>>, %arg7: memref<1x160xf32, #tpu.memory_space<vmem>>, %arg8: memref<2x160x80xf32, #tpu.memory_space<vmem>>, %arg9: memref<2x5x10xf32, #tpu.memory_space<vmem>>, %arg10: memref<5x80x120xf32, #tpu.memory_space<vmem>>, %arg11: memref<1x120xf32, #tpu.memory_space<vmem>>, %arg12: memref<120x84xf32, #tpu.memory_space<vmem>>, %arg13: memref<1x84xf32, #tpu.memory_space<vmem>>, %arg14: memref<84x10xf32, #tpu.memory_space<vmem>>, %arg15: memref<1x10xf32, #tpu.memory_space<vmem>>, %arg16: memref<1x1x10xf32, #tpu.memory_space<vmem>>, %arg17: memref<14x84xf32, #tpu.memory_space<vmem>>, %arg18: memref<5x80xf32, #tpu.memory_space<vmem>>) attributes {dimension_semantics = [#tpu.dimension_semantics<parallel>], iteration_bounds = array<i64: 2>, scalar_prefetch = 0 : i64, scratch_operands = 2 : i64, tpu.core_type = #tpu.core_type<tc>, window_params = [{transform_indices = @transform_0, window_bounds = array<i64: 32, 96>}, {pipeline_mode = #tpu.pipeline_mode<synchronous>, transform_indices = @transform_1, window_bounds = array<i64: 5, 96, 168>}, {pipeline_mode = #tpu.pipeline_mode<synchronous>, transform_indices = @transform_2, window_bounds = array<i64: 1, 168>}, {pipeline_mode = #tpu.pipeline_mode<synchronous>, transform_indices = @transform_3, window_bounds = array<i64: 2, 168, 84>}, {pipeline_mode = #tpu.pipeline_mode<synchronous>, transform_indices = @transform_4, window_bounds = array<i64: 2, 14, 28>}, {pipeline_mode = #tpu.pipeline_mode<synchronous>, transform_indices = @transform_5, window_bounds = array<i64: 5, 84, 160>}, {pipeline_mode = #tpu.pipeline_mode<synchronous>, transform_indices = @transform_6, window_bounds = array<i64: 1, 160>}, {pipeline_mode = #tpu.pipeline_mode<synchronous>, transform_indices = @transform_7, window_bounds = array<i64: 2, 160, 80>}, {pipeline_mode = #tpu.pipeline_mode<synchronous>, transform_indices = @transform_8, window_bounds = array<i64: 2, 5, 10>}, {pipeline_mode = #tpu.pipeline_mode<synchronous>, transform_indices = @transform_9, window_bounds = array<i64: 5, 80, 120>}, {pipeline_mode = #tpu.pipeline_mode<synchronous>, transform_indices = @transform_10, window_bounds = array<i64: 1, 120>}, {pipeline_mode = #tpu.pipeline_mode<synchronous>, transform_indices = @transform_11, window_bounds = array<i64: 120, 84>}, {pipeline_mode = #tpu.pipeline_mode<synchronous>, transform_indices = @transform_12, window_bounds = array<i64: 1, 84>}, {pipeline_mode = #tpu.pipeline_mode<synchronous>, transform_indices = @transform_13, window_bounds = array<i64: 84, 10>}, {pipeline_mode = #tpu.pipeline_mode<synchronous>, transform_indices = @transform_14, window_bounds = array<i64: 1, 10>}, {transform_indices = @transform_15, window_bounds = array<i64: 1, 1, 10>}]} {
    %c0 = arith.constant 0 : index
    %c0_0 = arith.constant 0 : index
    %0 = vector.load %arg1[%c0, %c0_0] : memref<32x96xf32, #tpu.memory_space<vmem>>, vector<28x96xf32>
    %c0_1 = arith.constant 0 : index
    %c0_2 = arith.constant 0 : index
    %c0_3 = arith.constant 0 : index
    %1 = vector.load %arg2[%c0_1, %c0_2, %c0_3] : memref<5x96x168xf32, #tpu.memory_space<vmem>>, vector<1x96x168xf32>
    %2 = vector.shape_cast %1 : vector<1x96x168xf32> to vector<96x168xf32>
    %cst = arith.constant dense<0.000000e+00> : vector<28x168xf32>
    %3 = tpu.matmul %0, %2, %cst {dimension_numbers = #tpu.dot_dimension_numbers<[1], [0], [0], [1], [0, 0, 1, 1], [], []>} : vector<28x96xf32>, vector<96x168xf32>, vector<28x168xf32> -> vector<28x168xf32>
    %c1 = arith.constant 1 : index
    %c0_4 = arith.constant 0 : index
    %4 = vector.load %arg1[%c1, %c0_4] : memref<32x96xf32, #tpu.memory_space<vmem>>, vector<28x96xf32>
    %c1_5 = arith.constant 1 : index
    %c0_6 = arith.constant 0 : index
    %c0_7 = arith.constant 0 : index
    %5 = vector.load %arg2[%c1_5, %c0_6, %c0_7] : memref<5x96x168xf32, #tpu.memory_space<vmem>>, vector<1x96x168xf32>
    %6 = vector.shape_cast %5 : vector<1x96x168xf32> to vector<96x168xf32>
    %cst_8 = arith.constant dense<0.000000e+00> : vector<28x168xf32>
    %7 = tpu.matmul %4, %6, %cst_8 {dimension_numbers = #tpu.dot_dimension_numbers<[1], [0], [0], [1], [0, 0, 1, 1], [], []>} : vector<28x96xf32>, vector<96x168xf32>, vector<28x168xf32> -> vector<28x168xf32>
    %8 = arith.addf %3, %7 : vector<28x168xf32>
    %c2 = arith.constant 2 : index
    %c0_9 = arith.constant 0 : index
    %9 = vector.load %arg1[%c2, %c0_9] : memref<32x96xf32, #tpu.memory_space<vmem>>, vector<28x96xf32>
    %c2_10 = arith.constant 2 : index
    %c0_11 = arith.constant 0 : index
    %c0_12 = arith.constant 0 : index
    %10 = vector.load %arg2[%c2_10, %c0_11, %c0_12] : memref<5x96x168xf32, #tpu.memory_space<vmem>>, vector<1x96x168xf32>
    %11 = vector.shape_cast %10 : vector<1x96x168xf32> to vector<96x168xf32>
    %cst_13 = arith.constant dense<0.000000e+00> : vector<28x168xf32>
    %12 = tpu.matmul %9, %11, %cst_13 {dimension_numbers = #tpu.dot_dimension_numbers<[1], [0], [0], [1], [0, 0, 1, 1], [], []>} : vector<28x96xf32>, vector<96x168xf32>, vector<28x168xf32> -> vector<28x168xf32>
    %13 = arith.addf %8, %12 : vector<28x168xf32>
    %c3 = arith.constant 3 : index
    %c0_14 = arith.constant 0 : index
    %14 = vector.load %arg1[%c3, %c0_14] : memref<32x96xf32, #tpu.memory_space<vmem>>, vector<28x96xf32>
    %c3_15 = arith.constant 3 : index
    %c0_16 = arith.constant 0 : index
    %c0_17 = arith.constant 0 : index
    %15 = vector.load %arg2[%c3_15, %c0_16, %c0_17] : memref<5x96x168xf32, #tpu.memory_space<vmem>>, vector<1x96x168xf32>
    %16 = vector.shape_cast %15 : vector<1x96x168xf32> to vector<96x168xf32>
    %cst_18 = arith.constant dense<0.000000e+00> : vector<28x168xf32>
    %17 = tpu.matmul %14, %16, %cst_18 {dimension_numbers = #tpu.dot_dimension_numbers<[1], [0], [0], [1], [0, 0, 1, 1], [], []>} : vector<28x96xf32>, vector<96x168xf32>, vector<28x168xf32> -> vector<28x168xf32>
    %18 = arith.addf %13, %17 : vector<28x168xf32>
    %c4 = arith.constant 4 : index
    %c0_19 = arith.constant 0 : index
    %19 = vector.load %arg1[%c4, %c0_19] : memref<32x96xf32, #tpu.memory_space<vmem>>, vector<28x96xf32>
    %c4_20 = arith.constant 4 : index
    %c0_21 = arith.constant 0 : index
    %c0_22 = arith.constant 0 : index
    %20 = vector.load %arg2[%c4_20, %c0_21, %c0_22] : memref<5x96x168xf32, #tpu.memory_space<vmem>>, vector<1x96x168xf32>
    %21 = vector.shape_cast %20 : vector<1x96x168xf32> to vector<96x168xf32>
    %cst_23 = arith.constant dense<0.000000e+00> : vector<28x168xf32>
    %22 = tpu.matmul %19, %21, %cst_23 {dimension_numbers = #tpu.dot_dimension_numbers<[1], [0], [0], [1], [0, 0, 1, 1], [], []>} : vector<28x96xf32>, vector<96x168xf32>, vector<28x168xf32> -> vector<28x168xf32>
    %23 = arith.addf %18, %22 : vector<28x168xf32>
    %c0_24 = arith.constant 0 : index
    %c0_25 = arith.constant 0 : index
    %24 = vector.load %arg3[%c0_24, %c0_25] : memref<1x168xf32, #tpu.memory_space<vmem>>, vector<1x168xf32>
    %25 = vector.broadcast %24 : vector<1x168xf32> to vector<28x168xf32>
    %26 = arith.addf %23, %25 : vector<28x168xf32>
    %cst_26 = arith.constant 0.000000e+00 : f32
    %27 = vector.broadcast %cst_26 : f32 to vector<28x168xf32>
    %28 = arith.maximumf %26, %27 : vector<28x168xf32>
    %c0_27 = arith.constant 0 : index
    %c0_28 = arith.constant 0 : index
    %c0_29 = arith.constant 0 : index
    %29 = vector.load %arg4[%c0_27, %c0_28, %c0_29] : memref<2x168x84xf32, #tpu.memory_space<vmem>>, vector<1x168x84xf32>
    %30 = vector.shape_cast %29 : vector<1x168x84xf32> to vector<168x84xf32>
    %cst_30 = arith.constant dense<0.000000e+00> : vector<28x84xf32>
    %31 = tpu.matmul %28, %30, %cst_30 {dimension_numbers = #tpu.dot_dimension_numbers<[1], [0], [0], [1], [0, 0, 1, 1], [], []>} : vector<28x168xf32>, vector<168x84xf32>, vector<28x84xf32> -> vector<28x84xf32>
    %c1_31 = arith.constant 1 : index
    %c0_32 = arith.constant 0 : index
    %c0_33 = arith.constant 0 : index
    %32 = vector.load %arg4[%c1_31, %c0_32, %c0_33] : memref<2x168x84xf32, #tpu.memory_space<vmem>>, vector<1x168x84xf32>
    %33 = vector.shape_cast %32 : vector<1x168x84xf32> to vector<168x84xf32>
    %cst_34 = arith.constant dense<0.000000e+00> : vector<28x84xf32>
    %34 = tpu.matmul %28, %33, %cst_34 {dimension_numbers = #tpu.dot_dimension_numbers<[1], [0], [0], [1], [0, 0, 1, 1], [], []>} : vector<28x168xf32>, vector<168x84xf32>, vector<28x84xf32> -> vector<28x84xf32>
    %35 = arith.maximumf %31, %34 : vector<28x84xf32>
    %c0_35 = arith.constant 0 : index
    %c0_36 = arith.constant 0 : index
    %c0_37 = arith.constant 0 : index
    %36 = vector.load %arg5[%c0_35, %c0_36, %c0_37] : memref<2x14x28xf32, #tpu.memory_space<vmem>>, vector<1x14x28xf32>
    %37 = vector.shape_cast %36 : vector<1x14x28xf32> to vector<14x28xf32>
    %cst_38 = arith.constant dense<0.000000e+00> : vector<14x84xf32>
    %38 = tpu.matmul %37, %35, %cst_38 {dimension_numbers = #tpu.dot_dimension_numbers<[1], [0], [0], [1], [0, 0, 1, 1], [], []>} : vector<14x28xf32>, vector<28x84xf32>, vector<14x84xf32> -> vector<14x84xf32>
    %c1_39 = arith.constant 1 : index
    %c0_40 = arith.constant 0 : index
    %c0_41 = arith.constant 0 : index
    %39 = vector.load %arg5[%c1_39, %c0_40, %c0_41] : memref<2x14x28xf32, #tpu.memory_space<vmem>>, vector<1x14x28xf32>
    %40 = vector.shape_cast %39 : vector<1x14x28xf32> to vector<14x28xf32>
    %cst_42 = arith.constant dense<0.000000e+00> : vector<14x84xf32>
    %41 = tpu.matmul %40, %35, %cst_42 {dimension_numbers = #tpu.dot_dimension_numbers<[1], [0], [0], [1], [0, 0, 1, 1], [], []>} : vector<14x28xf32>, vector<28x84xf32>, vector<14x84xf32> -> vector<14x84xf32>
    %42 = arith.maximumf %38, %41 : vector<14x84xf32>
    %c0_43 = arith.constant 0 : index
    %c0_44 = arith.constant 0 : index
    %43 = vector.load %arg17[%c0_43, %c0_44] : memref<14x84xf32, #tpu.memory_space<vmem>>, vector<14x84xf32>
    tpu.vector_store %arg17[%c0_43, %c0_44], %42 {strides = array<i32>} : memref<14x84xf32, #tpu.memory_space<vmem>>, vector<14x84xf32>,
    %c0_45 = arith.constant 0 : index
    %c0_46 = arith.constant 0 : index
    %44 = vector.load %arg17[%c0_45, %c0_46] : memref<14x84xf32, #tpu.memory_space<vmem>>, vector<10x84xf32>
    %c0_47 = arith.constant 0 : index
    %c0_48 = arith.constant 0 : index
    %c0_49 = arith.constant 0 : index
    %45 = vector.load %arg6[%c0_47, %c0_48, %c0_49] : memref<5x84x160xf32, #tpu.memory_space<vmem>>, vector<1x84x160xf32>
    %46 = vector.shape_cast %45 : vector<1x84x160xf32> to vector<84x160xf32>
    %cst_50 = arith.constant dense<0.000000e+00> : vector<10x160xf32>
    %47 = tpu.matmul %44, %46, %cst_50 {dimension_numbers = #tpu.dot_dimension_numbers<[1], [0], [0], [1], [0, 0, 1, 1], [], []>} : vector<10x84xf32>, vector<84x160xf32>, vector<10x160xf32> -> vector<10x160xf32>
    %c1_51 = arith.constant 1 : index
    %c0_52 = arith.constant 0 : index
    %48 = vector.load %arg17[%c1_51, %c0_52] : memref<14x84xf32, #tpu.memory_space<vmem>>, vector<10x84xf32>
    %c1_53 = arith.constant 1 : index
    %c0_54 = arith.constant 0 : index
    %c0_55 = arith.constant 0 : index
    %49 = vector.load %arg6[%c1_53, %c0_54, %c0_55] : memref<5x84x160xf32, #tpu.memory_space<vmem>>, vector<1x84x160xf32>
    %50 = vector.shape_cast %49 : vector<1x84x160xf32> to vector<84x160xf32>
    %cst_56 = arith.constant dense<0.000000e+00> : vector<10x160xf32>
    %51 = tpu.matmul %48, %50, %cst_56 {dimension_numbers = #tpu.dot_dimension_numbers<[1], [0], [0], [1], [0, 0, 1, 1], [], []>} : vector<10x84xf32>, vector<84x160xf32>, vector<10x160xf32> -> vector<10x160xf32>
    %52 = arith.addf %47, %51 : vector<10x160xf32>
    %c2_57 = arith.constant 2 : index
    %c0_58 = arith.constant 0 : index
    %53 = vector.load %arg17[%c2_57, %c0_58] : memref<14x84xf32, #tpu.memory_space<vmem>>, vector<10x84xf32>
    %c2_59 = arith.constant 2 : index
    %c0_60 = arith.constant 0 : index
    %c0_61 = arith.constant 0 : index
    %54 = vector.load %arg6[%c2_59, %c0_60, %c0_61] : memref<5x84x160xf32, #tpu.memory_space<vmem>>, vector<1x84x160xf32>
    %55 = vector.shape_cast %54 : vector<1x84x160xf32> to vector<84x160xf32>
    %cst_62 = arith.constant dense<0.000000e+00> : vector<10x160xf32>
    %56 = tpu.matmul %53, %55, %cst_62 {dimension_numbers = #tpu.dot_dimension_numbers<[1], [0], [0], [1], [0, 0, 1, 1], [], []>} : vector<10x84xf32>, vector<84x160xf32>, vector<10x160xf32> -> vector<10x160xf32>
    %57 = arith.addf %52, %56 : vector<10x160xf32>
    %c3_63 = arith.constant 3 : index
    %c0_64 = arith.constant 0 : index
    %58 = vector.load %arg17[%c3_63, %c0_64] : memref<14x84xf32, #tpu.memory_space<vmem>>, vector<10x84xf32>
    %c3_65 = arith.constant 3 : index
    %c0_66 = arith.constant 0 : index
    %c0_67 = arith.constant 0 : index
    %59 = vector.load %arg6[%c3_65, %c0_66, %c0_67] : memref<5x84x160xf32, #tpu.memory_space<vmem>>, vector<1x84x160xf32>
    %60 = vector.shape_cast %59 : vector<1x84x160xf32> to vector<84x160xf32>
    %cst_68 = arith.constant dense<0.000000e+00> : vector<10x160xf32>
    %61 = tpu.matmul %58, %60, %cst_68 {dimension_numbers = #tpu.dot_dimension_numbers<[1], [0], [0], [1], [0, 0, 1, 1], [], []>} : vector<10x84xf32>, vector<84x160xf32>, vector<10x160xf32> -> vector<10x160xf32>
    %62 = arith.addf %57, %61 : vector<10x160xf32>
    %c4_69 = arith.constant 4 : index
    %c0_70 = arith.constant 0 : index
    %63 = vector.load %arg17[%c4_69, %c0_70] : memref<14x84xf32, #tpu.memory_space<vmem>>, vector<10x84xf32>
    %c4_71 = arith.constant 4 : index
    %c0_72 = arith.constant 0 : index
    %c0_73 = arith.constant 0 : index
    %64 = vector.load %arg6[%c4_71, %c0_72, %c0_73] : memref<5x84x160xf32, #tpu.memory_space<vmem>>, vector<1x84x160xf32>
    %65 = vector.shape_cast %64 : vector<1x84x160xf32> to vector<84x160xf32>
    %cst_74 = arith.constant dense<0.000000e+00> : vector<10x160xf32>
    %66 = tpu.matmul %63, %65, %cst_74 {dimension_numbers = #tpu.dot_dimension_numbers<[1], [0], [0], [1], [0, 0, 1, 1], [], []>} : vector<10x84xf32>, vector<84x160xf32>, vector<10x160xf32> -> vector<10x160xf32>
    %67 = arith.addf %62, %66 : vector<10x160xf32>
    %c0_75 = arith.constant 0 : index
    %c0_76 = arith.constant 0 : index
    %68 = vector.load %arg7[%c0_75, %c0_76] : memref<1x160xf32, #tpu.memory_space<vmem>>, vector<1x160xf32>
    %69 = vector.broadcast %68 : vector<1x160xf32> to vector<10x160xf32>
    %70 = arith.addf %67, %69 : vector<10x160xf32>
    %cst_77 = arith.constant 0.000000e+00 : f32
    %71 = vector.broadcast %cst_77 : f32 to vector<10x160xf32>
    %72 = arith.maximumf %70, %71 : vector<10x160xf32>
    %c0_78 = arith.constant 0 : index
    %c0_79 = arith.constant 0 : index
    %c0_80 = arith.constant 0 : index
    %73 = vector.load %arg8[%c0_78, %c0_79, %c0_80] : memref<2x160x80xf32, #tpu.memory_space<vmem>>, vector<1x160x80xf32>
    %74 = vector.shape_cast %73 : vector<1x160x80xf32> to vector<160x80xf32>
    %cst_81 = arith.constant dense<0.000000e+00> : vector<10x80xf32>
    %75 = tpu.matmul %72, %74, %cst_81 {dimension_numbers = #tpu.dot_dimension_numbers<[1], [0], [0], [1], [0, 0, 1, 1], [], []>} : vector<10x160xf32>, vector<160x80xf32>, vector<10x80xf32> -> vector<10x80xf32>
    %c1_82 = arith.constant 1 : index
    %c0_83 = arith.constant 0 : index
    %c0_84 = arith.constant 0 : index
    %76 = vector.load %arg8[%c1_82, %c0_83, %c0_84] : memref<2x160x80xf32, #tpu.memory_space<vmem>>, vector<1x160x80xf32>
    %77 = vector.shape_cast %76 : vector<1x160x80xf32> to vector<160x80xf32>
    %cst_85 = arith.constant dense<0.000000e+00> : vector<10x80xf32>
    %78 = tpu.matmul %72, %77, %cst_85 {dimension_numbers = #tpu.dot_dimension_numbers<[1], [0], [0], [1], [0, 0, 1, 1], [], []>} : vector<10x160xf32>, vector<160x80xf32>, vector<10x80xf32> -> vector<10x80xf32>
    %79 = arith.maximumf %75, %78 : vector<10x80xf32>
    %c0_86 = arith.constant 0 : index
    %c0_87 = arith.constant 0 : index
    %c0_88 = arith.constant 0 : index
    %80 = vector.load %arg9[%c0_86, %c0_87, %c0_88] : memref<2x5x10xf32, #tpu.memory_space<vmem>>, vector<1x5x10xf32>
    %81 = vector.shape_cast %80 : vector<1x5x10xf32> to vector<5x10xf32>
    %cst_89 = arith.constant dense<0.000000e+00> : vector<5x80xf32>
    %82 = tpu.matmul %81, %79, %cst_89 {dimension_numbers = #tpu.dot_dimension_numbers<[1], [0], [0], [1], [0, 0, 1, 1], [], []>} : vector<5x10xf32>, vector<10x80xf32>, vector<5x80xf32> -> vector<5x80xf32>
    %c1_90 = arith.constant 1 : index
    %c0_91 = arith.constant 0 : index
    %c0_92 = arith.constant 0 : index
    %83 = vector.load %arg9[%c1_90, %c0_91, %c0_92] : memref<2x5x10xf32, #tpu.memory_space<vmem>>, vector<1x5x10xf32>
    %84 = vector.shape_cast %83 : vector<1x5x10xf32> to vector<5x10xf32>
    %cst_93 = arith.constant dense<0.000000e+00> : vector<5x80xf32>
    %85 = tpu.matmul %84, %79, %cst_93 {dimension_numbers = #tpu.dot_dimension_numbers<[1], [0], [0], [1], [0, 0, 1, 1], [], []>} : vector<5x10xf32>, vector<10x80xf32>, vector<5x80xf32> -> vector<5x80xf32>
    %86 = arith.maximumf %82, %85 : vector<5x80xf32>
    %c0_94 = arith.constant 0 : index
    %c0_95 = arith.constant 0 : index
    %87 = vector.load %arg18[%c0_94, %c0_95] : memref<5x80xf32, #tpu.memory_space<vmem>>, vector<5x80xf32>
    tpu.vector_store %arg18[%c0_94, %c0_95], %86 {strides = array<i32>} : memref<5x80xf32, #tpu.memory_space<vmem>>, vector<5x80xf32>,
    %c0_96 = arith.constant 0 : index
    %c0_97 = arith.constant 0 : index
    %88 = vector.load %arg18[%c0_96, %c0_97] : memref<5x80xf32, #tpu.memory_space<vmem>>, vector<1x80xf32>
    %c0_98 = arith.constant 0 : index
    %c0_99 = arith.constant 0 : index
    %c0_100 = arith.constant 0 : index
    %89 = vector.load %arg10[%c0_98, %c0_99, %c0_100] : memref<5x80x120xf32, #tpu.memory_space<vmem>>, vector<1x80x120xf32>
    %90 = vector.shape_cast %89 : vector<1x80x120xf32> to vector<80x120xf32>
    %cst_101 = arith.constant dense<0.000000e+00> : vector<1x120xf32>
    %91 = tpu.matmul %88, %90, %cst_101 {dimension_numbers = #tpu.dot_dimension_numbers<[1], [0], [0], [1], [0, 0, 1, 1], [], []>} : vector<1x80xf32>, vector<80x120xf32>, vector<1x120xf32> -> vector<1x120xf32>
    %c1_102 = arith.constant 1 : index
    %c0_103 = arith.constant 0 : index
    %92 = vector.load %arg18[%c1_102, %c0_103] : memref<5x80xf32, #tpu.memory_space<vmem>>, vector<1x80xf32>
    %c1_104 = arith.constant 1 : index
    %c0_105 = arith.constant 0 : index
    %c0_106 = arith.constant 0 : index
    %93 = vector.load %arg10[%c1_104, %c0_105, %c0_106] : memref<5x80x120xf32, #tpu.memory_space<vmem>>, vector<1x80x120xf32>
    %94 = vector.shape_cast %93 : vector<1x80x120xf32> to vector<80x120xf32>
    %cst_107 = arith.constant dense<0.000000e+00> : vector<1x120xf32>
    %95 = tpu.matmul %92, %94, %cst_107 {dimension_numbers = #tpu.dot_dimension_numbers<[1], [0], [0], [1], [0, 0, 1, 1], [], []>} : vector<1x80xf32>, vector<80x120xf32>, vector<1x120xf32> -> vector<1x120xf32>
    %96 = arith.addf %91, %95 : vector<1x120xf32>
    %c2_108 = arith.constant 2 : index
    %c0_109 = arith.constant 0 : index
    %97 = vector.load %arg18[%c2_108, %c0_109] : memref<5x80xf32, #tpu.memory_space<vmem>>, vector<1x80xf32>
    %c2_110 = arith.constant 2 : index
    %c0_111 = arith.constant 0 : index
    %c0_112 = arith.constant 0 : index
    %98 = vector.load %arg10[%c2_110, %c0_111, %c0_112] : memref<5x80x120xf32, #tpu.memory_space<vmem>>, vector<1x80x120xf32>
    %99 = vector.shape_cast %98 : vector<1x80x120xf32> to vector<80x120xf32>
    %cst_113 = arith.constant dense<0.000000e+00> : vector<1x120xf32>
    %100 = tpu.matmul %97, %99, %cst_113 {dimension_numbers = #tpu.dot_dimension_numbers<[1], [0], [0], [1], [0, 0, 1, 1], [], []>} : vector<1x80xf32>, vector<80x120xf32>, vector<1x120xf32> -> vector<1x120xf32>
    %101 = arith.addf %96, %100 : vector<1x120xf32>
    %c3_114 = arith.constant 3 : index
    %c0_115 = arith.constant 0 : index
    %102 = vector.load %arg18[%c3_114, %c0_115] : memref<5x80xf32, #tpu.memory_space<vmem>>, vector<1x80xf32>
    %c3_116 = arith.constant 3 : index
    %c0_117 = arith.constant 0 : index
    %c0_118 = arith.constant 0 : index
    %103 = vector.load %arg10[%c3_116, %c0_117, %c0_118] : memref<5x80x120xf32, #tpu.memory_space<vmem>>, vector<1x80x120xf32>
    %104 = vector.shape_cast %103 : vector<1x80x120xf32> to vector<80x120xf32>
    %cst_119 = arith.constant dense<0.000000e+00> : vector<1x120xf32>
    %105 = tpu.matmul %102, %104, %cst_119 {dimension_numbers = #tpu.dot_dimension_numbers<[1], [0], [0], [1], [0, 0, 1, 1], [], []>} : vector<1x80xf32>, vector<80x120xf32>, vector<1x120xf32> -> vector<1x120xf32>
    %106 = arith.addf %101, %105 : vector<1x120xf32>
    %c4_120 = arith.constant 4 : index
    %c0_121 = arith.constant 0 : index
    %107 = vector.load %arg18[%c4_120, %c0_121] : memref<5x80xf32, #tpu.memory_space<vmem>>, vector<1x80xf32>
    %c4_122 = arith.constant 4 : index
    %c0_123 = arith.constant 0 : index
    %c0_124 = arith.constant 0 : index
    %108 = vector.load %arg10[%c4_122, %c0_123, %c0_124] : memref<5x80x120xf32, #tpu.memory_space<vmem>>, vector<1x80x120xf32>
    %109 = vector.shape_cast %108 : vector<1x80x120xf32> to vector<80x120xf32>
    %cst_125 = arith.constant dense<0.000000e+00> : vector<1x120xf32>
    %110 = tpu.matmul %107, %109, %cst_125 {dimension_numbers = #tpu.dot_dimension_numbers<[1], [0], [0], [1], [0, 0, 1, 1], [], []>} : vector<1x80xf32>, vector<80x120xf32>, vector<1x120xf32> -> vector<1x120xf32>
    %111 = arith.addf %106, %110 : vector<1x120xf32>
    %c0_126 = arith.constant 0 : index
    %c0_127 = arith.constant 0 : index
    %112 = vector.load %arg11[%c0_126, %c0_127] : memref<1x120xf32, #tpu.memory_space<vmem>>, vector<1x120xf32>
    %113 = arith.addf %111, %112 : vector<1x120xf32>
    %cst_128 = arith.constant 0.000000e+00 : f32
    %114 = vector.broadcast %cst_128 : f32 to vector<1x120xf32>
    %115 = arith.maximumf %113, %114 : vector<1x120xf32>
    %c0_129 = arith.constant 0 : index
    %c0_130 = arith.constant 0 : index
    %116 = vector.load %arg12[%c0_129, %c0_130] : memref<120x84xf32, #tpu.memory_space<vmem>>, vector<120x84xf32>
    %cst_131 = arith.constant dense<0.000000e+00> : vector<1x84xf32>
    %117 = tpu.matmul %115, %116, %cst_131 {dimension_numbers = #tpu.dot_dimension_numbers<[1], [0], [0], [1], [0, 0, 1, 1], [], []>} : vector<1x120xf32>, vector<120x84xf32>, vector<1x84xf32> -> vector<1x84xf32>
    %c0_132 = arith.constant 0 : index
    %c0_133 = arith.constant 0 : index
    %118 = vector.load %arg13[%c0_132, %c0_133] : memref<1x84xf32, #tpu.memory_space<vmem>>, vector<1x84xf32>
    %119 = arith.addf %117, %118 : vector<1x84xf32>
    %cst_134 = arith.constant 0.000000e+00 : f32
    %120 = vector.broadcast %cst_134 : f32 to vector<1x84xf32>
    %121 = arith.maximumf %119, %120 : vector<1x84xf32>
    %c0_135 = arith.constant 0 : index
    %c0_136 = arith.constant 0 : index
    %122 = vector.load %arg14[%c0_135, %c0_136] : memref<84x10xf32, #tpu.memory_space<vmem>>, vector<84x10xf32>
    %cst_137 = arith.constant dense<0.000000e+00> : vector<1x10xf32>
    %123 = tpu.matmul %121, %122, %cst_137 {dimension_numbers = #tpu.dot_dimension_numbers<[1], [0], [0], [1], [0, 0, 1, 1], [], []>} : vector<1x84xf32>, vector<84x10xf32>, vector<1x10xf32> -> vector<1x10xf32>
    %c0_138 = arith.constant 0 : index
    %c0_139 = arith.constant 0 : index
    %124 = vector.load %arg15[%c0_138, %c0_139] : memref<1x10xf32, #tpu.memory_space<vmem>>, vector<1x10xf32>
    %125 = arith.addf %123, %124 : vector<1x10xf32>
    %cst_140 = arith.constant dense<0xFF800000> : vector<1xf32>
    %126 = vector.multi_reduction <maximumf>, %125, %cst_140 [1] : vector<1x10xf32> to vector<1xf32>
    %127 = vector.shape_cast %126 : vector<1xf32> to vector<1x1xf32>
    %128 = vector.broadcast %127 : vector<1x1xf32> to vector<1x10xf32>
    %129 = arith.subf %125, %128 : vector<1x10xf32>
    %130 = math.exp %129 : vector<1x10xf32>
    %cst_141 = arith.constant dense<0.000000e+00> : vector<1xf32>
    %131 = vector.multi_reduction <add>, %130, %cst_141 [1] : vector<1x10xf32> to vector<1xf32>
    %132 = vector.shape_cast %131 : vector<1xf32> to vector<1x1xf32>
    %133 = math.log %132 : vector<1x1xf32>
    %134 = arith.addf %133, %127 : vector<1x1xf32>
    %135 = vector.broadcast %134 : vector<1x1xf32> to vector<1x10xf32>
    %136 = arith.subf %125, %135 : vector<1x10xf32>
    %c0_142 = arith.constant 0 : index
    %c0_143 = arith.constant 0 : index
    %c0_144 = arith.constant 0 : index
    %137 = vector.load %arg16[%c0_142, %c0_143, %c0_144] : memref<1x1x10xf32, #tpu.memory_space<vmem>>, vector<1x1x10xf32>
    %138 = vector.shape_cast %137 : vector<1x1x10xf32> to vector<1x10xf32>
    %139 = vector.shape_cast %136 : vector<1x10xf32> to vector<1x1x10xf32>
    tpu.vector_store %arg16[%c0_142, %c0_143, %c0_144], %139 {strides = array<i32>} : memref<1x1x10xf32, #tpu.memory_space<vmem>>, vector<1x1x10xf32>,
    return
  }
  func.func @transform_0(%arg0: i32) -> (i32, i32) {
    %c0_i32 = arith.constant 0 : i32
    %c0_i32_0 = arith.constant 0 : i32
    return %arg0, %c0_i32 : i32, i32
  }
  func.func @transform_1(%arg0: i32) -> (i32, i32, i32) {
    %c0_i32 = arith.constant 0 : i32
    %c0_i32_0 = arith.constant 0 : i32
    %c0_i32_1 = arith.constant 0 : i32
    %c0_i32_2 = arith.constant 0 : i32
    return %c0_i32, %c0_i32_0, %c0_i32_1 : i32, i32, i32
  }
  func.func @transform_2(%arg0: i32) -> (i32, i32) {
    %c0_i32 = arith.constant 0 : i32
    %c0_i32_0 = arith.constant 0 : i32
    %c0_i32_1 = arith.constant 0 : i32
    return %c0_i32, %c0_i32_0 : i32, i32
  }
  func.func @transform_3(%arg0: i32) -> (i32, i32, i32) {
    %c0_i32 = arith.constant 0 : i32
    %c0_i32_0 = arith.constant 0 : i32
    %c0_i32_1 = arith.constant 0 : i32
    %c0_i32_2 = arith.constant 0 : i32
    return %c0_i32, %c0_i32_0, %c0_i32_1 : i32, i32, i32
  }
  func.func @transform_4(%arg0: i32) -> (i32, i32, i32) {
    %c0_i32 = arith.constant 0 : i32
    %c0_i32_0 = arith.constant 0 : i32
    %c0_i32_1 = arith.constant 0 : i32
    %c0_i32_2 = arith.constant 0 : i32
    return %c0_i32, %c0_i32_0, %c0_i32_1 : i32, i32, i32
  }
  func.func @transform_5(%arg0: i32) -> (i32, i32, i32) {
    %c0_i32 = arith.constant 0 : i32
    %c0_i32_0 = arith.constant 0 : i32
    %c0_i32_1 = arith.constant 0 : i32
    %c0_i32_2 = arith.constant 0 : i32
    return %c0_i32, %c0_i32_0, %c0_i32_1 : i32, i32, i32
  }
  func.func @transform_6(%arg0: i32) -> (i32, i32) {
    %c0_i32 = arith.constant 0 : i32
    %c0_i32_0 = arith.constant 0 : i32
    %c0_i32_1 = arith.constant 0 : i32
    return %c0_i32, %c0_i32_0 : i32, i32
  }
  func.func @transform_7(%arg0: i32) -> (i32, i32, i32) {
    %c0_i32 = arith.constant 0 : i32
    %c0_i32_0 = arith.constant 0 : i32
    %c0_i32_1 = arith.constant 0 : i32
    %c0_i32_2 = arith.constant 0 : i32
    return %c0_i32, %c0_i32_0, %c0_i32_1 : i32, i32, i32
  }
  func.func @transform_8(%arg0: i32) -> (i32, i32, i32) {
    %c0_i32 = arith.constant 0 : i32
    %c0_i32_0 = arith.constant 0 : i32
    %c0_i32_1 = arith.constant 0 : i32
    %c0_i32_2 = arith.constant 0 : i32
    return %c0_i32, %c0_i32_0, %c0_i32_1 : i32, i32, i32
  }
  func.func @transform_9(%arg0: i32) -> (i32, i32, i32) {
    %c0_i32 = arith.constant 0 : i32
    %c0_i32_0 = arith.constant 0 : i32
    %c0_i32_1 = arith.constant 0 : i32
    %c0_i32_2 = arith.constant 0 : i32
    return %c0_i32, %c0_i32_0, %c0_i32_1 : i32, i32, i32
  }
  func.func @transform_10(%arg0: i32) -> (i32, i32) {
    %c0_i32 = arith.constant 0 : i32
    %c0_i32_0 = arith.constant 0 : i32
    %c0_i32_1 = arith.constant 0 : i32
    return %c0_i32, %c0_i32_0 : i32, i32
  }
  func.func @transform_11(%arg0: i32) -> (i32, i32) {
    %c0_i32 = arith.constant 0 : i32
    %c0_i32_0 = arith.constant 0 : i32
    %c0_i32_1 = arith.constant 0 : i32
    return %c0_i32, %c0_i32_0 : i32, i32
  }
  func.func @transform_12(%arg0: i32) -> (i32, i32) {
    %c0_i32 = arith.constant 0 : i32
    %c0_i32_0 = arith.constant 0 : i32
    %c0_i32_1 = arith.constant 0 : i32
    return %c0_i32, %c0_i32_0 : i32, i32
  }
  func.func @transform_13(%arg0: i32) -> (i32, i32) {
    %c0_i32 = arith.constant 0 : i32
    %c0_i32_0 = arith.constant 0 : i32
    %c0_i32_1 = arith.constant 0 : i32
    return %c0_i32, %c0_i32_0 : i32, i32
  }
  func.func @transform_14(%arg0: i32) -> (i32, i32) {
    %c0_i32 = arith.constant 0 : i32
    %c0_i32_0 = arith.constant 0 : i32
    %c0_i32_1 = arith.constant 0 : i32
    return %c0_i32, %c0_i32_0 : i32, i32
  }
  func.func @transform_15(%arg0: i32) -> (i32, i32, i32) {
    %c0_i32 = arith.constant 0 : i32
    %c0_i32_0 = arith.constant 0 : i32
    %c0_i32_1 = arith.constant 0 : i32
    return %arg0, %c0_i32, %c0_i32_0 : i32, i32, i32
  }
}

</mosaic_0001>

<bundles_post_ra>
// kernel: net_forward.1
= control target key start
LH: loop header
LB: loop body
LE: loop exit
PB: predicated region body
PF: predicated region fallthrough
CT: control target
= control target key end

     0   :  { %s6205_s0 = inlined_call_operand.vmem [shape: f32[64,96], index: 0, kind: input, shape index: {}]   ;;  %s6206_s1 = inlined_call_operand.vmem [shape: f32[5,96,168], index: 1, kind: input, shape index: {}]   ;;  %s6207_s2 = inlined_call_operand.vmem [shape: f32[1,168], index: 2, kind: input, shape index: {}]   ;;  %s6208_s3 = inlined_call_operand.vmem [shape: f32[2,168,84], index: 3, kind: input, shape index: {}]   ;;  %s6209_s4 = inlined_call_operand.vmem [shape: f32[2,14,28], index: 4, kind: input, shape index: {}]   ;;  %s6210_s5 = inlined_call_operand.vmem [shape: f32[5,84,160], index: 5, kind: input, shape index: {}]   ;;  %s6211_s6 = inlined_call_operand.vmem [shape: f32[1,160], index: 6, kind: input, shape index: {}]   ;;  %s6212_s7 = inlined_call_operand.vmem [shape: f32[2,160,80], index: 7, kind: input, shape index: {}]   ;;  %s6213_s8 = inlined_call_operand.vmem [shape: f32[2,5,10], index: 8, kind: input, shape index: {}]   ;;  %s6214_s9 = inlined_call_operand.vmem [shape: f32[5,80,120], index: 9, kind: input, shape index: {}]   ;;  %s6215_s10 = inlined_call_operand.vmem [shape: f32[1,120], index: 10, kind: input, shape index: {}]   ;;  %s6216_s11 = inlined_call_operand.vmem [shape: f32[120,84], index: 11, kind: input, shape index: {}]   ;;  %s6217_s12 = inlined_call_operand.vmem [shape: f32[1,84], index: 12, kind: input, shape index: {}]   ;;  %s6218_s13 = inlined_call_operand.vmem [shape: f32[84,10], index: 13, kind: input, shape index: {}]   ;;  %s6219_s14 = inlined_call_operand.vmem [shape: f32[1,10], index: 14, kind: input, shape index: {}]   ;;  %s6220_s15 = inlined_call_operand.hbm [shape: f32[2,1,10], index: 15, kind: output, shape index: {}]  }
   0x1   :  { %6227 = sst [smem:[#allocation13_spill]] %s6205_s0 }
   0x2   :  { %20 = vsyncpa [#allocation5], 0 }
   0x3   :  { %22 = vsyncpa [#allocation5 + $0x1], 0  ;;  %s4635_s18 = smov 0   ;;  %s4637_s19 = smov 0  }
   0x4   :  { %s4639_s20 = smov 0   ;;  %s4641_s21 = smov 0  }
   0x5 LB: > { %6228 = sst [smem:[#allocation7_spill]] %s4536_s18  ;;  %s4656_s22 = sadd.s32 4294967295, %s4548_s21   ;;  %s4548_s21 = sphi %s4641_s21, %s6242_s21   ;;  %s4544_s20 = sphi %s4639_s20, %s6244_s20   ;;  %s4540_s19 = sphi %s4637_s19, %s6246_s19   ;;  %s4536_s18 = sphi %s4635_s18, %s6245_s18  }
   0x6   : > { %6229 = sst [smem:[#allocation8_spill]] %s4544_s20  ;;  %s3255_s23 = sadd.s32 4294967294, %s4548_s21  }
   0x7   : > { %6230 = sst [smem:[#allocation9_spill]] %s4548_s21  ;;  %s4660_s24 = sadd.s32 1, %s4548_s21  }
   0x8   : > { %6231 = sst [smem:[#allocation10_spill]] %s4660_s24  ;;  %s355_s25 = sadd.s32 1, %s4544_s20 }
   0x9   : > { %s352_s26 = ssub.s32 %s4548_s21, %s4660_s24  ;;  %p365_p0 = scmp.ne.s32.totalorder %s4544_s20, %s4540_s19 }
   0xa   : > { %p353_p1 = scmp.eq.s32.totalorder %s352_s26, 0  ;;  %p366_p2 = scmp.eq.s32.totalorder %s4656_s22, 1 }
   0xb   : > { %p371_p3 = scmp.ne.s32.totalorder %s4540_s19, %s4536_s18  ;;  %p372_p4 = scmp.eq.s32.totalorder %s3255_s23, 1 }
   0xc   : > { %s4671_s27 = scalar_select %p353_p1, %s4544_s20, %s355_s25  }
   0xd   : > { %p4673_p5 = por %p366_p2, %p365_p0  ;;  %p4677_p6 = por %p372_p4, %p371_p3 }
   0xe   : > { %6232 = sst [smem:[#allocation11_spill]] %s4671_s27  ;;  %p3258_p7 = scmp.ge.s32.totalorder %s4548_s21, 1 }
   0xf   : > { %s6234_s29 = scalar_select %p4677_p6, 1, 0 }
  0x10   : > { %p441_p8 = scmp.lt.s32.totalorder %s4548_s21, 3 }
  0x11   : > { %6235 = sst [smem:[#allocation12_spill]] %s6234_s29 }
  0x12   : > { %p442_p9 = pnand %p3258_p7, %p441_p8 }
  0x13   : > { %v3262_v0 = vld [vmem:[%s6206_s1 + $0xc8] sm:$0xff] (!%p442_p9)  ;;  %v3264_v1 = vld [vmem:[%s6206_s1 + $0xd8] sm:$0xff] (!%p442_p9)  ;;  %v3261_v2 = vld [vmem:[%s6206_s1 + $0xc0] sm:$0xff] (!%p442_p9)  ;;  %v4550_v7 = vmov (!%p442_p9), 0.0   ;;  %s3259_s29 = sshll.u32 (!%p442_p9), %s4656_s22, 2  ;;  %v4551_v21 = vmov (!%p442_p9), 0.0|0.0  }
  0x14   : > { %445 = sbr.rel (%p442_p9) target bundleno = 2680 (0xa78), region = 80  ;;  %v3912_v3 = vpack.c.bf16 (!%p442_p9), %v3264_v1, %v3262_v0  ;;  %v3263_v4 = vld [vmem:[%s6206_s1 + $0xd0] sm:$0xff] (!%p442_p9)  ;;  %v3266_v5 = vld [vmem:[%s6206_s1 + $0xe8] sm:$0xff] (!%p442_p9)  ;;  %v3268_v6 = vld [vmem:[%s6206_s1 + $0xf8] sm:$0xff] (!%p442_p9)  ;;  %628 = vmatprep.mubr.f32.mxu0 (!%p442_p9), %v4550_v7  ;;  %4032 = vmatprep.subr.bf16.mxu1 (!%p442_p9), %v4551_v21  ;;  %p489_p10 = scmp.lt.s32.totalorder (!%p442_p9), %s3259_s29, 7  ;;  %vm551_vm0 = vcmask (!%p442_p9), 785408  }
  0x15   : > { %v3914_v8 = vpack.c.bf16 (!%p442_p9), %v3263_v4, %v3261_v2  ;;  %v3916_v9 = vpack.c.bf16 (!%p442_p9), %v3268_v6, %v3266_v5  ;;  %v3265_v10 = vld [vmem:[%s6206_s1 + $0xe0] sm:$0xff] (!%p442_p9)  ;;  %v3267_v11 = vld [vmem:[%s6206_s1 + $0xf0] sm:$0xff] (!%p442_p9)  ;;  %v3270_v12 = vld [vmem:[%s6206_s1 + $0x108] sm:$0xff] (!%p442_p9)  ;;  %s6236_s0 = sld [smem:[#allocation13_spill]] (!%p442_p9)  ;;  %vm1217_vm1 = vcmask (!%p442_p9), 326656   ;;  %vm1428_vm2 = vcmask (!%p442_p9), 228352  }
  0x16   : > { %3913 = vmatprep.subr.bf16.mxu0 (!%p442_p9), %v3912_v3  ;;  %v3272_v13 = vld [vmem:[%s6206_s1 + $0x118] sm:$0xff] (!%p442_p9)  ;;  %v3918_v14 = vpack.c.bf16 (!%p442_p9), %v3267_v11, %v3265_v10  ;;  %v3269_v16 = vld [vmem:[%s6206_s1 + $0x100] sm:$0xff] (!%p442_p9)  ;;  %v3271_v17 = vld [vmem:[%s6206_s1 + $0x110] sm:$0xff] (!%p442_p9)  ;;  %vm1435_vm3 = vcmask (!%p442_p9), 1043456   ;;  %vm4552_vm4 = vmmov (!%p442_p9), 1   ;;  %vm1602_vm6 = vcmask (!%p442_p9), 685056  }
  0x17   : > { %3915 = vmatpush1.bf16.msra.mxu0 (!%p442_p9), %v3914_v8  ;;  %v3920_v15 = vpack.c.bf16 (!%p442_p9), %v3272_v13, %v3270_v12  ;;  %v3274_v18 = vld [vmem:[%s6206_s1 + $0x128] sm:$0xff] (!%p442_p9)  ;;  %v3276_v19 = vld [vmem:[%s6206_s1 + $0x138] sm:$0xff] (!%p442_p9)  ;;  %v3922_v20 = vpack.c.bf16 (!%p442_p9), %v3271_v17, %v3269_v16  ;;  %v3273_v23 = vld [vmem:[%s6206_s1 + $0x120] sm:$0xff] (!%p442_p9)  ;;  %vm1600_vm7 = vcmask (!%p442_p9), 687104   ;;  %vm2225_vm8 = vcmask (!%p442_p9), 261120   ;;  %s486_s18 = sand.u32 (!%p442_p9), 1, %s4540_s19  }
  0x18   : > { %3917 = vmatprep.subr.bf16.mxu0 (!%p442_p9), %v3916_v9  ;;  %v3924_v22 = vpack.c.bf16 (!%p442_p9), %v3276_v19, %v3274_v18  ;;  %v3275_v24 = vld [vmem:[%s6206_s1 + $0x130] sm:$0xff] (!%p442_p9)  ;;  %v3278_v25 = vld [vmem:[%s6206_s1 + $0x148] sm:$0xff] (!%p442_p9)  ;;  %v3280_v26 = vld [vmem:[%s6206_s1 + $0x158] sm:$0xff] (!%p442_p9)  ;;  %vm4553_vm9 = vmmov (!%p442_p9), 0   ;;  %vm2410_vm10 = vcmask (!%p442_p9), 1041408   ;;  %vm2406_vm12 = vcmask (!%p442_p9), 80896  }
  0x19   : > { %v3926_v27 = vpack.c.bf16 (!%p442_p9), %v3275_v24, %v3273_v23  ;;  %v3928_v28 = vpack.c.bf16 (!%p442_p9), %v3280_v26, %v3278_v25  ;;  %v3277_v29 = vld [vmem:[%s6206_s1 + $0x140] sm:$0xff] (!%p442_p9)  ;;  %v3279_v30 = vld [vmem:[%s6206_s1 + $0x150] sm:$0xff] (!%p442_p9)  ;;  %v3282_v31 = vld [vmem:[%s6206_s1 + $0x168] sm:$0xff] (!%p442_p9)  ;;  %vm2560_vm13 = vcmask (!%p442_p9), 651264   ;;  %vm2585_vm14 = vcmask (!%p442_p9), 654336   ;;  %s3599_s21 = sshll.u32 (!%p442_p9), %s4656_s22, 4 }
  0x1a   : > { %v3284_v32 = vld [vmem:[%s6206_s1 + $0x178] sm:$0xff] (!%p442_p9)  ;;  %v3930_v33 = vpack.c.bf16 (!%p442_p9), %v3279_v30, %v3277_v29  ;;  %v3281_v35 = vld [vmem:[%s6206_s1 + $0x160] sm:$0xff] (!%p442_p9)  ;;  %v3283_v36 = vld [vmem:[%s6206_s1 + $0x170] sm:$0xff] (!%p442_p9)  ;;  %vm3009_vm15 = vcmask (!%p442_p9), 982016   ;;  %s487_s23 = scalar_lea.vmem (!%p442_p9), [#allocation4], %s486_s18  ;;  %s6162_s26 = scalar_lea.hbm (!%p442_p9), %s6220_s15, %s3599_s21 }
  0x1b   : > { %3919 = vmatpush1.bf16.msra.mxu0 %v3918_v14  ;;  %s6248_s29 = smov (!%p489_p10, %s3259_s29), 7  ;;  %v3932_v34 = vpack.c.bf16 %v3284_v32, %v3282_v31  ;;  %v499_v37 = vld [vmem:[%s6206_s1 + $0x8] sm:$0xff]  ;;  %v501_v38 = vld [vmem:[%s6206_s1 + $0x18] sm:$0xff]  ;;  %v3934_v39 = vpack.c.bf16 %v3283_v36, %v3281_v35  ;;  %v498_v41 = vld [vmem:[%s6206_s1] sm:$0xff]  ;;  %s3200_s25 = sshll.u32 %s487_s23, 4  ;;  %s6164_s25 = int_to_ptr.vmem [resolvable:$true] %s3200_s25 }
  0x1c   : > { %3921 = vmatprep.subr.bf16.mxu0 %v3920_v15  ;;  %s3260_s30 = sshll.u32 %s6248_s29, 3  ;;  %v3936_v40 = vpack.c.bf16 %v501_v38, %v499_v37  ;;  %v500_v42 = vld [vmem:[%s6206_s1 + $0x10] sm:$0xff]  ;;  %v503_v43 = vld [vmem:[%s6206_s1 + $0x28] sm:$0xff]  ;;  %v505_v44 = vld [vmem:[%s6206_s1 + $0x38] sm:$0xff]  ;;  %s4486_s16 = scalar_lea.vmem %s6164_s25, 16 }
  0x1d   : > { %s4767_s20 = scalar_lea.vmem %s6236_s0, %s3260_s30  ;;  %v3938_v46 = vpack.c.bf16 %v500_v42, %v498_v41  ;;  %v3940_v47 = vpack.c.bf16 %v505_v44, %v503_v43  ;;  %v502_v48 = vld [vmem:[%s6206_s1 + $0x20] sm:$0xff]  ;;  %v504_v49 = vld [vmem:[%s6206_s1 + $0x30] sm:$0xff]  ;;  %v507_v50 = vld [vmem:[%s6206_s1 + $0x48] sm:$0xff]  ;;  %s3188_s30 = scalar_lea.sflag [#allocation5], %s486_s18 }
  0x1e   : > { %v522_v45 = vld [vmem:[%s4767_s20 + $0x1] sm:$0xff]  ;;  %v509_v51 = vld [vmem:[%s6206_s1 + $0x58] sm:$0xff]  ;;  %v3942_v52 = vpack.c.bf16 %v504_v49, %v502_v48  ;;  %v523_v53 = vld [vmem:[%s4767_s20 + $0x9] sm:$0xff]  ;;  %p4487_p11 = scmp.ne.s32.totalorder %s6164_s25, %s4486_s16  ;;  %s4554_s22 = smov [#allocation4]  }
  0x1f   : > { %3923 = vmatpush1.bf16.msra.mxu0 %v3922_v20  ;;  %v3944_v54 = vpack.c.bf16 %v509_v51, %v507_v50  ;;  %v506_v55 = vld [vmem:[%s6206_s1 + $0x40] sm:$0xff]  ;;  %v508_v56 = vld [vmem:[%s6206_s1 + $0x50] sm:$0xff]  ;;  %v511_v57 = vld [vmem:[%s6206_s1 + $0x68] sm:$0xff]  ;;  %s4490_s0 = sshll.u32 %s4554_s22, 4  ;;  %s4491_s0 = int_to_ptr.vmem [resolvable:$false] %s4490_s0 }
  0x20   : > { %3925 = vmatprep.subr.bf16.mxu0 %v3924_v22  ;;  %v513_v58 = vld [vmem:[%s6206_s1 + $0x78] sm:$0xff]  ;;  %v3946_v59 = vpack.c.bf16 %v508_v56, %v506_v55  ;;  %v510_v62 = vld [vmem:[%s6206_s1 + $0x60] sm:$0xff]  ;;  %v512_v63 = vld [vmem:[%s6206_s1 + $0x70] sm:$0xff]  ;;  %p4488_p12 = pnand %p4487_p11, %p4673_p5  ;;  %s4492_s17 = scalar_lea.vmem %s4491_s0, 32 }
  0x21   : > { %v524_v60 = vld [vmem:[%s4767_s20 + $0x11] sm:$0xff]  ;;  %v3948_v61 = vpack.c.bf16 %v513_v58, %v511_v57  ;;  %v515_v0 = vld [vmem:[%s6206_s1 + $0x88] sm:$0xff]  ;;  %v3950_v2 = vpack.c.bf16 %v512_v63, %v510_v62  ;;  %v525_v3 = vld [vmem:[%s4767_s20 + $0x19] sm:$0xf]  ;;  %p4493_p0 = scmp.lt.s32.totalorder %s6164_s25, %s4491_s0  ;;  %p4494_p1 = scmp.lt.s32.totalorder %s4492_s17, %s4486_s16 }
  0x22   : > { %v517_v1 = vld [vmem:[%s6206_s1 + $0x98] sm:$0xff]  ;;  %v514_v5 = vld [vmem:[%s6206_s1 + $0x80] sm:$0xff]  ;;  %v516_v6 = vld [vmem:[%s6206_s1 + $0x90] sm:$0xff]  ;;  %p4489_p13 = pneg %p4488_p12 }
  0x23   : > { %3927 = vmatpush1.bf16.msra.mxu0 %v3926_v27  ;;  %v3952_v4 = vpack.c.bf16 %v517_v1, %v515_v0  ;;  %v519_v8 = vld [vmem:[%s6206_s1 + $0xa8] sm:$0xff]  ;;  %v521_v9 = vld [vmem:[%s6206_s1 + $0xb8] sm:$0xff]  ;;  %v3954_v10 = vpack.c.bf16 %v516_v6, %v514_v5  ;;  %v518_v12 = vld [vmem:[%s6206_s1 + $0xa0] sm:$0xff]  ;;  %p4495_p2 = por %p4494_p1, %p4493_p0 }
  0x24   : > { %3929 = vmatprep.subr.bf16.mxu0 %v3928_v28  ;;  %v3956_v11 = vpack.c.bf16 %v521_v9, %v519_v8  ;;  %v520_v13 = vld [vmem:[%s6206_s1 + $0xb0] sm:$0xff]  ;;  %v3294_v14 = vld [vmem:[%s6206_s1 + $0x188] sm:$0xff]  ;;  %v3296_v15 = vld [vmem:[%s6206_s1 + $0x198] sm:$0xff] }
  0x25   : > { %v3958_v16 = vpack.c.bf16 %v520_v13, %v518_v12  ;;  %v3960_v17 = vpack.c.bf16 %v3296_v15, %v3294_v14  ;;  %v3293_v18 = vld [vmem:[%s6206_s1 + $0x180] sm:$0xff]  ;;  %v3295_v19 = vld [vmem:[%s6206_s1 + $0x190] sm:$0xff]  ;;  %v3298_v20 = vld [vmem:[%s6206_s1 + $0x1a8] sm:$0xff]  ;;  %p4496_p3 = pnand %p4495_p2, %p4489_p13 }
  0x26   : > { %v3300_v22 = vld [vmem:[%s6206_s1 + $0x1b8] sm:$0xff]  ;;  %v1196_v23 = vld [vmem:[%s6208_s3] sm:$0xff]  ;;  %v1197_v24 = vld [vmem:[%s6208_s3 + $0x8] sm:$0xff]  ;;  %v3962_v28 = vpack.c.bf16 %v3295_v19, %v3293_v18 }
  0x27   : > { %3931 = vmatpush1.bf16.msra.mxu0 %v3930_v33  ;;  %v1198_v25 = vld [vmem:[%s6208_s3 + $0x10] sm:$0xff]  ;;  %v1199_v26 = vld [vmem:[%s6208_s3 + $0x18] sm:$0xff]  ;;  %v494_v27 = vld [vmem:[%s4767_s20] sm:$0xff]  ;;  %v4033_v29 = vpack.c.bf16 %v1197_v24, %v1196_v23  ;;  %v3964_v30 = vpack.c.bf16 %v3300_v22, %v3298_v20 }
  0x28   : > { %3933 = vmatprep.subr.bf16.mxu0 %v3932_v34  ;;  %v3297_v31 = vld [vmem:[%s6206_s1 + $0x1a0] sm:$0xff]  ;;  %v3299_v32 = vld [vmem:[%s6206_s1 + $0x1b0] sm:$0xff]  ;;  %v3302_v33 = vld [vmem:[%s6206_s1 + $0x1c8] sm:$0xff]  ;;  %v4036_v35 = vpack.c.bf16 %v1199_v26, %v1198_v25 }
  0x29   : > { %v3304_v34 = vld [vmem:[%s6206_s1 + $0x1d8] sm:$0xff]  ;;  %4034 = vmatpush1.bf16.msra.mxu1 %v4033_v29  ;;  %v1200_v36 = vld [vmem:[%s6208_s3 + $0x20] sm:$0xff]  ;;  %v1201_v37 = vld [vmem:[%s6208_s3 + $0x28] sm:$0xff]  ;;  %v3966_v38 = vpack.c.bf16 %v3299_v32, %v3297_v31 }
  0x2a   : > { %4035 = vmatprep.subr.bf16.mxu1 %v4551_v21  ;;  %v3301_v41 = vld [vmem:[%s6206_s1 + $0x1c0] sm:$0xff]  ;;  %v3303_v42 = vld [vmem:[%s6206_s1 + $0x1d0] sm:$0xff]  ;;  %v3306_v43 = vld [vmem:[%s6206_s1 + $0x1e8] sm:$0xff] }
  0x2b   : > { %3935 = vmatpush1.bf16.msra.mxu0 %v3934_v39  ;;  %v495_v39 = vld [vmem:[%s4767_s20 + $0x8] sm:$0xff]  ;;  %v3308_v44 = vld [vmem:[%s6206_s1 + $0x1f8] sm:$0xff]  ;;  %v3970_v48 = vpack.c.bf16 %v3303_v42, %v3301_v41  ;;  %v496_v49 = vld [vmem:[%s4767_s20 + $0x10] sm:$0xff] }
  0x2c   : > { %3937 = vmatprep.subr.bf16.mxu0 %v3936_v40  ;;  %v3968_v40 = vpack.c.bf16 %v3304_v34, %v3302_v33  ;;  %v3972_v50 = vpack.c.bf16 %v3308_v44, %v3306_v43  ;;  %v3305_v51 = vld [vmem:[%s6206_s1 + $0x1e0] sm:$0xff]  ;;  %v1205_v57 = vld [vmem:[%s6208_s3 + $0x48] sm:$0xff]  ;;  %v3311_v62 = vld [vmem:[%s6206_s1 + $0x210] sm:$0xff] }
  0x2d   : > { %4037 = vmatpush1.bf16.msra.mxu1 %v4036_v35  ;;  %v1204_v56 = vld [vmem:[%s6208_s3 + $0x40] sm:$0xff]  ;;  %v3314_v63 = vld [vmem:[%s6206_s1 + $0x228] sm:$0xff]  ;;  %v3316_v0 = vld [vmem:[%s6206_s1 + $0x238] sm:$0xff] }
  0x2e   : > { %3285 = vmatmul.mubr.msk.f32.vlgmr.msra.gmra.mrb[0].mxu0 %vm551_vm0, %v522_v45  ;;  %v4039_v45 = vpack.c.bf16 %v1201_v37, %v1200_v36  ;;  %4038 = vmatprep.subr.bf16.mxu1 %v4551_v21  ;;  %v4045_v1 = vpack.c.bf16 %v1205_v57, %v1204_v56  ;;  %v3980_v5 = vpack.c.bf16 %v3316_v0, %v3314_v63  ;;  %v3313_v6 = vld [vmem:[%s6206_s1 + $0x220] sm:$0xff]  ;;  %v3315_v8 = vld [vmem:[%s6206_s1 + $0x230] sm:$0xff]  ;;  %v3322_v9 = vld [vmem:[%s6206_s1 + $0x248] sm:$0xff] }
  0x2f   : > { %3939 = vmatpush1.bf16.msra.mxu0 %v3938_v46  ;;  %634 = vmatprep.mubr.f32.mxu0 %v4550_v7  ;;  %v1202_v46 = vld [vmem:[%s6208_s3 + $0x30] sm:$0xff]  ;;  %v1208_v12 = vld [vmem:[%s6208_s3 + $0x60] sm:$0xff]  ;;  %v1209_v13 = vld [vmem:[%s6208_s3 + $0x68] sm:$0xff]  ;;  %v3982_v14 = vpack.c.bf16 %v3315_v8, %v3313_v6 }
  0x30   : > { %3941 = vmatprep.subr.bf16.mxu0 %v3940_v47  ;;  %v1203_v47 = vld [vmem:[%s6208_s3 + $0x38] sm:$0xff]  ;;  %v3326_v18 = vld [vmem:[%s6206_s1 + $0x268] sm:$0xff]  ;;  %v4051_v20 = vpack.c.bf16 %v1209_v13, %v1208_v12  ;;  %v1210_v22 = vld [vmem:[%s6208_s3 + $0x70] sm:$0xff] }
  0x31   : > { %4040 = vmatpush1.bf16.msra.mxu1 %v4039_v45  ;;  %v4042_v55 = vpack.c.bf16 %v1203_v47, %v1202_v46  ;;  %v3328_v19 = vld [vmem:[%s6206_s1 + $0x278] sm:$0xff]  ;;  %v754_v24 = vld [vmem:[%s4767_s20 + $0x2] sm:$0xff]  ;;  %v755_v35 = vld [vmem:[%s4767_s20 + $0xa] sm:$0xff] }
  0x32   : > { %3286 = vmatmul.mubr.msk.f32.gmra.mrb[2].mxu0 %vm551_vm0, %v523_v53  ;;  %v3310_v53 = vld [vmem:[%s6206_s1 + $0x208] sm:$0xff]  ;;  %4041 = vmatprep.subr.bf16.mxu1 %v4551_v21  ;;  %v1211_v23 = vld [vmem:[%s6208_s3 + $0x78] sm:$0xff]  ;;  %v3988_v26 = vpack.c.bf16 %v3328_v19, %v3326_v18  ;;  %v1212_v32 = vld [vmem:[%s6208_s3 + $0x80] sm:$0xff] }
  0x33   : > { %3943 = vmatpush1.bf16.msra.mxu0 %v3942_v52  ;;  %640 = vmatprep.mubr.f32.mxu0 %v4550_v7  ;;  %v3307_v52 = vld [vmem:[%s6206_s1 + $0x1f0] sm:$0xff]  ;;  %v3330_v29 = vld [vmem:[%s6206_s1 + $0x288] sm:$0xff]  ;;  %v4054_v31 = vpack.c.bf16 %v1211_v23, %v1210_v22  ;;  %v3329_v37 = vld [vmem:[%s6206_s1 + $0x280] sm:$0xff] }
  0x34   : > { %3945 = vmatprep.subr.bf16.mxu0 %v3944_v54  ;;  %v3312_v54 = vld [vmem:[%s6206_s1 + $0x218] sm:$0xff]  ;;  %v3974_v58 = vpack.c.bf16 %v3307_v52, %v3305_v51  ;;  %v1213_v33 = vld [vmem:[%s6208_s3 + $0x88] sm:$0xff]  ;;  %v3333_v45 = vld [vmem:[%s6206_s1 + $0x2a0] sm:$0xff] }
  0x35   : > { %4043 = vmatpush1.bf16.msra.mxu1 %v4042_v55  ;;  %v4057_v41 = vpack.c.bf16 %v1213_v33, %v1212_v32  ;;  %v756_v43 = vld [vmem:[%s4767_s20 + $0x12] sm:$0xff]  ;;  %v3338_v47 = vld [vmem:[%s6206_s1 + $0x2c8] sm:$0xff]  ;;  %v3337_v52 = vld [vmem:[%s6206_s1 + $0x2c0] sm:$0xff] }
  0x36   : > { %3287 = vmatmul.mubr.msk.f32.gmra.mrb[4].mxu0 %vm551_vm0, %v524_v60  ;;  %v3976_v60 = vpack.c.bf16 %v3312_v54, %v3310_v53  ;;  %4044 = vmatprep.subr.bf16.mxu1 %v4551_v21  ;;  %v3335_v46 = vld [vmem:[%s6206_s1 + $0x2b0] sm:$0xff]  ;;  %v3342_v54 = vld [vmem:[%s6206_s1 + $0x2e8] sm:$0xff]  ;;  %v3344_v55 = vld [vmem:[%s6206_s1 + $0x2f8] sm:$0xff] }
  0x37   : > { %3947 = vmatpush1.bf16.msra.mxu0 %v3946_v59  ;;  %646 = vmatprep.mubr.f32.mxu0 %v4550_v7  ;;  %v497_v59 = vld [vmem:[%s4767_s20 + $0x18] sm:$0xf]  ;;  %v3339_v53 = vld [vmem:[%s6206_s1 + $0x2d0] sm:$0xff]  ;;  %v4004_v57 = vpack.c.bf16 %v3344_v55, %v3342_v54  ;;  %v3349_v0 = vld [vmem:[%s6206_s1 + $0x300] sm:$0xff] }
  0x38   : > { %3949 = vmatprep.subr.bf16.mxu0 %v3948_v61  ;;  %v3309_v61 = vld [vmem:[%s6206_s1 + $0x200] sm:$0xff]  ;;  %v4002_v56 = vpack.c.bf16 %v3339_v53, %v3337_v52  ;;  %v893_v13 = vld [vmem:[%s4767_s20 + $0xb] sm:$0xff]  ;;  %v3364_v18 = vld [vmem:[%s6206_s1 + $0x378] sm:$0xff] }
  0x39   : > { %4046 = vmatpush1.bf16.msra.mxu1 %v4045_v1  ;;  %v3351_v1 = vld [vmem:[%s6206_s1 + $0x310] sm:$0xff]  ;;  %v3353_v8 = vld [vmem:[%s6206_s1 + $0x320] sm:$0xff]  ;;  %v3370_v32 = vld [vmem:[%s6206_s1 + $0x3a8] sm:$0xff] }
  0x3a   : > { %3288 = vmatmul.mubr.msk.f32.gmra.mrb[6].mxu0 %vm551_vm0, %v525_v3  ;;  %v1207_v3 = vld [vmem:[%s6208_s3 + $0x58] sm:$0xff]  ;;  %4047 = vmatprep.subr.bf16.mxu1 %v4551_v21  ;;  %v3361_v23 = vld [vmem:[%s6206_s1 + $0x360] sm:$0xff]  ;;  %vm5307_vm5 = vmpackc.low %vm1435_vm3, %vm4552_vm4 }
  0x3b   : > { %3951 = vmatpush1.bf16.msra.mxu0 %v3950_v2  ;;  %729 = vmatprep.mubr.f32.mxu0 %v4550_v7  ;;  %v1206_v2 = vld [vmem:[%s6208_s3 + $0x50] sm:$0xff]  ;;  %v3372_v33 = vld [vmem:[%s6206_s1 + $0x3b8] sm:$0xff]  ;;  %vm4274_vm11 = vmpackc.low %vm2410_vm10, %vm4552_vm4 }
  0x3c   : > { %3953 = vmatprep.subr.bf16.mxu0 %v3952_v4  ;;  %v3978_v4 = vpack.c.bf16 %v3311_v62, %v3309_v61  ;;  %v3352_v61 = vld [vmem:[%s6206_s1 + $0x318] sm:$0xff] }
  0x3f   : > { %3955 = vmatpush1.bf16.msra.mxu0 %v3954_v10  ;;  %v3324_v10 = vld [vmem:[%s6206_s1 + $0x258] sm:$0xff] }
  0x40   : > { %3957 = vmatprep.subr.bf16.mxu0 %v3956_v11  ;;  %v4048_v11 = vpack.c.bf16 %v1207_v3, %v1206_v2  ;;  %v3984_v15 = vpack.c.bf16 %v3324_v10, %v3322_v9  ;;  %v3354_v2 = vld [vmem:[%s6206_s1 + $0x328] sm:$0xff]  ;;  %v3356_v3 = vld [vmem:[%s6206_s1 + $0x338] sm:$0xff]  ;;  %v3355_v9 = vld [vmem:[%s6206_s1 + $0x330] sm:$0xff] }
  0x41   : > { %v4012_v6 = vpack.c.bf16 %v3356_v3, %v3354_v2  ;;  %v3358_v10 = vld [vmem:[%s6206_s1 + $0x348] sm:$0xff]  ;;  %v4014_v12 = vpack.c.bf16 %v3355_v9, %v3353_v8  ;;  %v3383_v2 = vld [vmem:[%s6208_s3 + $0xb8] sm:$0xff]  ;;  %v3384_v3 = vld [vmem:[%s6208_s3 + $0xc0] sm:$0xff] }
  0x42   : > { %4049 = vmatpush1.bf16.msra.mxu1 %v4048_v11  ;;  %v3360_v11 = vld [vmem:[%s6206_s1 + $0x358] sm:$0xff]  ;;  %v4066_v8 = vpack.c.bf16 %v3384_v3, %v3383_v2 }
  0x43   : > { %3959 = vmatpush1.bf16.msra.mxu0 %v3958_v16  ;;  %v3321_v16 = vld [vmem:[%s6206_s1 + $0x240] sm:$0xff]  ;;  %4050 = vmatprep.subr.bf16.mxu1 %v4551_v21 }
  0x44   : > { %3961 = vmatprep.subr.bf16.mxu0 %v3960_v17  ;;  %v3323_v17 = vld [vmem:[%s6206_s1 + $0x250] sm:$0xff] }
  0x45   : > { %v3986_v25 = vpack.c.bf16 %v3323_v17, %v3321_v16  ;;  %v3359_v16 = vld [vmem:[%s6206_s1 + $0x350] sm:$0xff]  ;;  %v3362_v17 = vld [vmem:[%s6206_s1 + $0x368] sm:$0xff] }
  0x46   : > { %3289 = vmatmul.mubr.msk.f32.vlgmr.msra.gmra.mrb[0].mxu0 %vm551_vm0, %v494_v27  ;;  %v3325_v27 = vld [vmem:[%s6206_s1 + $0x260] sm:$0xff]  ;;  %4052 = vmatpush1.bf16.msra.mxu1 %v4051_v20  ;;  %v894_v20 = vld [vmem:[%s4767_s20 + $0x13] sm:$0xff]  ;;  %v4020_v22 = vpack.c.bf16 %v3364_v18, %v3362_v17 }
  0x47   : > { %3963 = vmatpush1.bf16.msra.mxu0 %v3962_v28  ;;  %735 = vmatprep.mubr.f32.mxu0 %v4550_v7  ;;  %v3327_v28 = vld [vmem:[%s6206_s1 + $0x270] sm:$0xff] }
  0x48   : > { %3965 = vmatprep.subr.bf16.mxu0 %v3964_v30  ;;  %v3332_v30 = vld [vmem:[%s6206_s1 + $0x298] sm:$0xff]  ;;  %4053 = vmatprep.subr.bf16.mxu1 %v4551_v21  ;;  %v3990_v34 = vpack.c.bf16 %v3327_v28, %v3325_v27 }
  0x49   : > { %v3992_v36 = vpack.c.bf16 %v3332_v30, %v3330_v29  ;;  %v895_v28 = vld [vmem:[%s4767_s20 + $0x1b] sm:$0xf]  ;;  %v3365_v30 = vld [vmem:[%s6206_s1 + $0x380] sm:$0xff] }
  0x4a   : > { %3290 = vmatmul.mubr.msk.f32.gmra.mrb[2].mxu0 %vm551_vm0, %v495_v39  ;;  %v3334_v39 = vld [vmem:[%s6206_s1 + $0x2a8] sm:$0xff]  ;;  %4055 = vmatpush1.bf16.msra.mxu1 %v4054_v31  ;;  %v3367_v31 = vld [vmem:[%s6206_s1 + $0x390] sm:$0xff] }
  0x4b   : > { %3967 = vmatpush1.bf16.msra.mxu0 %v3966_v38  ;;  %741 = vmatprep.mubr.f32.mxu0 %v4550_v7  ;;  %v3331_v38 = vld [vmem:[%s6206_s1 + $0x290] sm:$0xff] }
  0x4c   : > { %3969 = vmatprep.subr.bf16.mxu0 %v3968_v40  ;;  %v3336_v40 = vld [vmem:[%s6206_s1 + $0x2b8] sm:$0xff]  ;;  %4056 = vmatprep.subr.bf16.mxu1 %v4551_v21  ;;  %v3994_v42 = vpack.c.bf16 %v3331_v38, %v3329_v37  ;;  %v3371_v37 = vld [vmem:[%s6206_s1 + $0x3b0] sm:$0xff] }
  0x4d   : > { %v3996_v44 = vpack.c.bf16 %v3336_v40, %v3334_v39  ;;  %v1030_v39 = vld [vmem:[%s4767_s20 + $0x4] sm:$0xff]  ;;  %v1031_v40 = vld [vmem:[%s4767_s20 + $0xc] sm:$0xff] }
  0x4e   : > { %3291 = vmatmul.mubr.msk.f32.gmra.mrb[4].mxu0 %vm551_vm0, %v496_v49  ;;  %4058 = vmatpush1.bf16.msra.mxu1 %v4057_v41  ;;  %v3998_v49 = vpack.c.bf16 %v3335_v46, %v3333_v45  ;;  %v1032_v41 = vld [vmem:[%s4767_s20 + $0x14] sm:$0xff]  ;;  %v1216_v46 = vld [vmem:[%s6208_s3 + $0xa0] sm:$0xff] }
  0x4f   : > { %3971 = vmatpush1.bf16.msra.mxu0 %v3970_v48  ;;  %747 = vmatprep.mubr.f32.mxu0 %v4550_v7  ;;  %v3340_v48 = vld [vmem:[%s6206_s1 + $0x2d8] sm:$0xff] }
  0x50   : > { %3973 = vmatprep.subr.bf16.mxu0 %v3972_v50  ;;  %4059 = vmatprep.subr.bf16.mxu1 %v4551_v21  ;;  %v757_v50 = vld [vmem:[%s4767_s20 + $0x1a] sm:$0xf]  ;;  %v4000_v51 = vpack.c.bf16 %v3340_v48, %v3338_v47  ;;  %v1170_v47 = vlaneseq }
  0x52   : > { %3292 = vmatmul.mubr.msk.f32.gmra.mrb[6].mxu0 %vm551_vm0, %v497_v59  ;;  %v3343_v59 = vld [vmem:[%s6206_s1 + $0x2f0] sm:$0xff]  ;;  %v5185_v48 = vshrl.u32 %v1170_v47, 7  ;;  %v1426_v47 = vld [vmem:[%s6209_s4] sm:$0xff] }
  0x53   : > { %3975 = vmatpush1.bf16.msra.mxu0 %v3974_v58  ;;  %859 = vmatprep.mubr.f32.mxu0 %v4550_v7  ;;  %v3341_v58 = vld [vmem:[%s6206_s1 + $0x2e0] sm:$0xff] }
  0x54   : > { %3977 = vmatprep.subr.bf16.mxu0 %v3976_v60  ;;  %v3350_v60 = vld [vmem:[%s6206_s1 + $0x308] sm:$0xff]  ;;  %v4006_v62 = vpack.c.bf16 %v3343_v59, %v3341_v58  ;;  %v3382_v58 = vld [vmem:[%s6208_s3 + $0xb0] sm:$0xff] }
  0x55   : > { %v4008_v63 = vpack.c.bf16 %v3352_v61, %v3350_v60 }
  0x57   : > { %3979 = vmatpush1.bf16.msra.mxu0 %v3978_v4  ;;  %v892_v4 = vld [vmem:[%s4767_s20 + $0x3] sm:$0xff] }
  0x58   : > { %3981 = vmatprep.subr.bf16.mxu0 %v3980_v5  ;;  %v4010_v5 = vpack.c.bf16 %v3351_v1, %v3349_v0 }
  0x5b   : > { %3983 = vmatpush1.bf16.msra.mxu0 %v3982_v14  ;;  %v4016_v14 = vpack.c.bf16 %v3360_v11, %v3358_v10 }
  0x5c   : > { %3985 = vmatprep.subr.bf16.mxu0 %v3984_v15  ;;  %v3357_v15 = vld [vmem:[%s6206_s1 + $0x340] sm:$0xff] }
  0x5d   : > { %v4018_v19 = vpack.c.bf16 %v3359_v16, %v3357_v15 }
  0x5e   : > { %3317 = vmatmul.mubr.msk.f32.vlgmr.msra.gmra.mrb[0].mxu0 %vm551_vm0, %v754_v24  ;;  %v3363_v24 = vld [vmem:[%s6206_s1 + $0x370] sm:$0xff] }
  0x5f   : > { %3987 = vmatpush1.bf16.msra.mxu0 %v3986_v25  ;;  %865 = vmatprep.mubr.f32.mxu0 %v4550_v7  ;;  %v3366_v25 = vld [vmem:[%s6206_s1 + $0x388] sm:$0xff]  ;;  %v4022_v27 = vpack.c.bf16 %v3363_v24, %v3361_v23  ;;  %v3388_v23 = vld [vmem:[%s6208_s3 + $0xe0] sm:$0xff] }
  0x60   : > { %3989 = vmatprep.subr.bf16.mxu0 %v3988_v26  ;;  %v3368_v26 = vld [vmem:[%s6206_s1 + $0x398] sm:$0xff] }
  0x61   : > { %v4024_v29 = vpack.c.bf16 %v3368_v26, %v3366_v25 }
  0x62   : > { %3318 = vmatmul.mubr.msk.f32.gmra.mrb[2].mxu0 %vm551_vm0, %v755_v35  ;;  %v4028_v35 = vpack.c.bf16 %v3372_v33, %v3370_v32  ;;  %v3392_v32 = vld [vmem:[%s6208_s3 + $0x100] sm:$0xff] }
  0x63   : > { %3991 = vmatpush1.bf16.msra.mxu0 %v3990_v34  ;;  %871 = vmatprep.mubr.f32.mxu0 %v4550_v7  ;;  %v4026_v34 = vpack.c.bf16 %v3367_v31, %v3365_v30  ;;  %v3391_v31 = vld [vmem:[%s6208_s3 + $0xf8] sm:$0xff] }
  0x64   : > { %3993 = vmatprep.subr.bf16.mxu0 %v3992_v36  ;;  %v3369_v36 = vld [vmem:[%s6206_s1 + $0x3a0] sm:$0xff]  ;;  %v4078_v33 = vpack.c.bf16 %v3392_v32, %v3391_v31 }
  0x65   : > { %v4030_v38 = vpack.c.bf16 %v3371_v37, %v3369_v36  ;;  %v3395_v37 = vld [vmem:[%s6208_s3 + $0x118] sm:$0xff]  ;;  %v3424_v31 = vld [vmem:[%s6210_s5 + $0x100] sm:$0xff] }
  0x66   : > { %3319 = vmatmul.mubr.msk.f32.gmra.mrb[4].mxu0 %vm551_vm0, %v756_v43  ;;  %v1214_v43 = vld [vmem:[%s6208_s3 + $0x90] sm:$0xff] }
  0x67   : > { %3995 = vmatpush1.bf16.msra.mxu0 %v3994_v42  ;;  %877 = vmatprep.mubr.f32.mxu0 %v4550_v7  ;;  %v1033_v42 = vld [vmem:[%s4767_s20 + $0x1c] sm:$0xf] }
  0x68   : > { %3997 = vmatprep.subr.bf16.mxu0 %v3996_v44  ;;  %v1215_v44 = vld [vmem:[%s6208_s3 + $0x98] sm:$0xff] }
  0x69   : > { %v4060_v45 = vpack.c.bf16 %v1215_v44, %v1214_v43  ;;  %v3399_v43 = vld [vmem:[%s6208_s3 + $0x138] sm:$0xff]  ;;  %v3400_v44 = vld [vmem:[%s6208_s3 + $0x140] sm:$0xff] }
  0x6a   : > { %3320 = vmatmul.mubr.msk.f32.gmra.mrb[6].mxu0 %vm551_vm0, %v757_v50  ;;  %v1168_v50 = vld [vmem:[%s6207_s2] sm:$0x3] }
  0x6b   : > { %3999 = vmatpush1.bf16.msra.mxu0 %v3998_v49  ;;  %997 = vmatprep.mubr.f32.mxu0 %v4550_v7  ;;  %v1172_v49 = vsub.s32 0, %v5185_v48 }
  0x6c   : > { %4001 = vmatprep.subr.bf16.mxu0 %v4000_v51  ;;  %4061 = vmatpush1.bf16.msra.mxu1 %v4060_v45  ;;  %v1176_v51 = vsub.s32 1, %v5185_v48  ;;  %v4090_v45 = vpack.c.bf16 %v3400_v44, %v3399_v43  ;;  %v3432_v43 = vld [vmem:[%s6210_s5 + $0x140] sm:$0xff] }
  0x6d   : > { %1270 = vmatprep.subr.mxu1 %v4550_v7  ;;  %v1173_v52 = vrot.slane %v1168_v50, %v1172_v49 }
  0x6e   : > { %v1177_v53 = vrot.slane %v1168_v50, %v1176_v51 }
  0x6f   : > { %4003 = vmatpush1.bf16.msra.mxu0 %v4002_v56 }
  0x70   : > { %4005 = vmatprep.subr.bf16.mxu0 %v4004_v57  ;;  %1271 = vmatpush1.msra.mxu1 %v1216_v46  ;;  %v3381_v57 = vld [vmem:[%s6208_s3 + $0xa8] sm:$0xff] }
  0x71   : > { %4062 = vmatprep.subr.bf16.mxu1 %v4551_v21  ;;  %v3401_v46 = vld [vmem:[%s6208_s3 + $0x148] sm:$0xff] }
  0x73   : > { %4007 = vmatpush1.bf16.msra.mxu0 %v4006_v62  ;;  %v4063_v62 = vpack.c.bf16 %v3382_v58, %v3381_v57 }
  0x74   : > { %4009 = vmatprep.subr.bf16.mxu0 %v4008_v63 }
  0x76   : > { %3345 = vmatmul.mubr.msk.f32.vlgmr.msra.gmra.mrb[0].mxu0 %vm551_vm0, %v892_v4 }
  0x77   : > { %4011 = vmatpush1.bf16.msra.mxu0 %v4010_v5  ;;  %1003 = vmatprep.mubr.f32.mxu0 %v4550_v7 }
  0x78   : > { %4013 = vmatprep.subr.bf16.mxu0 %v4012_v6 }
  0x7a   : > { %3346 = vmatmul.mubr.msk.f32.gmra.mrb[2].mxu0 %vm551_vm0, %v893_v13  ;;  %v3386_v13 = vld [vmem:[%s6208_s3 + $0xd0] sm:$0xff] }
  0x7b   : > { %4015 = vmatpush1.bf16.msra.mxu0 %v4014_v12  ;;  %1009 = vmatprep.mubr.f32.mxu0 %v4550_v7  ;;  %v3385_v12 = vld [vmem:[%s6208_s3 + $0xc8] sm:$0xff] }
  0x7c   : > { %4017 = vmatprep.subr.bf16.mxu0 %v4016_v14  ;;  %v4069_v17 = vpack.c.bf16 %v3386_v13, %v3385_v12  ;;  %v3409_v12 = vld [vmem:[%s6209_s4 + $0x10] sm:$0xff]  ;;  %v3415_v13 = vld [vmem:[%s6210_s5 + $0xb8] sm:$0xff] }
  0x7e   : > { %3347 = vmatmul.mubr.msk.f32.gmra.mrb[4].mxu0 %vm551_vm0, %v894_v20 }
  0x7f   : > { %4019 = vmatpush1.bf16.msra.mxu0 %v4018_v19  ;;  %1015 = vmatprep.mubr.f32.mxu0 %v4550_v7 }
  0x80   : > { %4021 = vmatprep.subr.bf16.mxu0 %v4020_v22  ;;  %v3387_v22 = vld [vmem:[%s6208_s3 + $0xd8] sm:$0xff] }
  0x81   : > { %v4072_v26 = vpack.c.bf16 %v3388_v23, %v3387_v22  ;;  %v3421_v22 = vld [vmem:[%s6210_s5 + $0xe8] sm:$0xff] }
  0x82   : > { %3348 = vmatmul.mubr.msk.f32.gmra.mrb[6].mxu0 %vm551_vm0, %v895_v28  ;;  %v3389_v28 = vld [vmem:[%s6208_s3 + $0xe8] sm:$0xff] }
  0x83   : > { %4023 = vmatpush1.bf16.msra.mxu0 %v4022_v27  ;;  %1135 = vmatprep.mubr.f32.mxu0 %v4550_v7 }
  0x84   : > { %4025 = vmatprep.subr.bf16.mxu0 %v4024_v29  ;;  %v3390_v29 = vld [vmem:[%s6208_s3 + $0xf0] sm:$0xff] }
  0x85   : > { %v4075_v30 = vpack.c.bf16 %v3390_v29, %v3389_v28  ;;  %v3425_v28 = vld [vmem:[%s6210_s5 + $0x108] sm:$0xff]  ;;  %v3422_v29 = vld [vmem:[%s6210_s5 + $0xf0] sm:$0xff] }
  0x86   : > { %v4122_v32 = vpack.c.bf16 %v3424_v31, %v3422_v29  ;;  %v1612_v31 = vld [vmem:[%s6210_s5 + $0x30] sm:$0xff] }
  0x87   : > { %4027 = vmatpush1.bf16.msra.mxu0 %v4026_v34  ;;  %v3393_v34 = vld [vmem:[%s6208_s3 + $0x108] sm:$0xff] }
  0x88   : > { %4029 = vmatprep.subr.bf16.mxu0 %v4028_v35  ;;  %v3394_v35 = vld [vmem:[%s6208_s3 + $0x110] sm:$0xff] }
  0x89   : > { %v4081_v36 = vpack.c.bf16 %v3394_v35, %v3393_v34  ;;  %v3429_v34 = vld [vmem:[%s6210_s5 + $0x128] sm:$0xff] }
  0x8b   : > { %4031 = vmatpush1.bf16.msra.mxu0 %v4030_v38  ;;  %v3396_v38 = vld [vmem:[%s6208_s3 + $0x120] sm:$0xff] }
  0x8c   : > { %4212 = vmatprep.subr.bf16.mxu0 %v4551_v21 }
  0x8e   : > { %3373 = vmatmul.mubr.msk.f32.vlgmr.msra.gmra.mrb[0].mxu0 %vm551_vm0, %v1030_v39  ;;  %v4084_v39 = vpack.c.bf16 %v3396_v38, %v3395_v37  ;;  %v3428_v37 = vld [vmem:[%s6210_s5 + $0x120] sm:$0xff] }
  0x8f   : > { %1141 = vmatprep.mubr.f32.mxu0 %v4550_v7 }
  0x92   : > { %3374 = vmatmul.mubr.msk.f32.gmra.mrb[2].mxu0 %vm551_vm0, %v1031_v40  ;;  %v3397_v40 = vld [vmem:[%s6208_s3 + $0x128] sm:$0xff] }
  0x93   : > { %1147 = vmatprep.mubr.f32.mxu0 %v4550_v7 }
  0x96   : > { %3375 = vmatmul.mubr.msk.f32.gmra.mrb[4].mxu0 %vm551_vm0, %v1032_v41  ;;  %v3398_v41 = vld [vmem:[%s6208_s3 + $0x130] sm:$0xff] }
  0x97   : > { %1153 = vmatprep.mubr.f32.mxu0 %v4550_v7 }
  0x9a   : > { %3376 = vmatmul.mubr.msk.f32.gmra.mrb[6].mxu0 %vm551_vm0, %v1033_v42  ;;  %v4087_v42 = vpack.c.bf16 %v3398_v41, %v3397_v40  ;;  %v3433_v40 = vld [vmem:[%s6210_s5 + $0x148] sm:$0xff]  ;;  %vm3172_vm0 = vcmask 73728  }
 0x161   : > { %v1137_v54 = vpop.f32.mrb[0].mxu0 }
 0x162   : > { %v5196_v55 = vadd.f32 %v1173_v52, %v1137_v54  ;;  %v1139_v56 = vpop.f32.mrb[1].mxu0 }
 0x163   : > { %v1181_v59 = vadd.f32 %v1177_v53, %v1139_v56 }
 0x164   : > { %v1188_v63 = vmax.f32 %v5196_v55, 0.0 }
 0x165   : > { %v1189_v60 = vmax.f32 %v1181_v59, 0.0  ;;  %v1143_v61 = vpop.f32.mrb[2].mxu0 }
 0x166   : > { %v5205_v0 = vadd.f32 %v1173_v52, %v1143_v61  ;;  %v1145_v1 = vpop.f32.mrb[3].mxu0 }
 0x167   : > { %v5213_v4 = vadd.f32 %v1177_v53, %v1145_v1  ;;  %3377 = vmatprep.mubr.msk.f32.mxu1 %vm1217_vm1, %v1189_v60 }
 0x168   : > { %1295 = vmatmul.mubr.f32.vlgmr.msra.gmra.mrb[0].mxu1 %v1188_v63  ;;  %v1190_v9 = vmax.f32 %v5205_v0, 0.0 }
 0x169   : > { %v1191_v5 = vmax.f32 %v5213_v4, 0.0  ;;  %4064 = vmatpush1.bf16.msra.mxu1 %v4063_v62  ;;  %v1149_v6 = vpop.f32.mrb[4].mxu0 }
 0x16a   : > { %v5220_v10 = vadd.f32 %v1173_v52, %v1149_v6  ;;  %v1151_v11 = vpop.f32.mrb[5].mxu0  ;;  %4065 = vmatprep.subr.bf16.mxu1 %v4551_v21 }
 0x16b   : > { %v1185_v14 = vadd.f32 %v1177_v53, %v1151_v11  ;;  %3378 = vmatprep.mubr.msk.f32.mxu1 %vm1217_vm1, %v1191_v5  ;;  %v1427_v11 = vld [vmem:[%s6209_s4 + $0x8] sm:$0x3f] }
 0x16c   : > { %1300 = vmatmul.mubr.f32.gmra.mrb[2].mxu1 %v1190_v9  ;;  %v1192_v18 = vmax.f32 %v5220_v10, 0.0 }
 0x16d   : > { %v1193_v15 = vmax.f32 %v1185_v14, 0.0  ;;  %4067 = vmatpush1.bf16.msra.mxu1 %v4066_v8  ;;  %v1155_v16 = vpop.f32.mrb[6].mxu0  ;;  %v3417_v14 = vld [vmem:[%s6210_s5 + $0xc8] sm:$0xff] }
 0x16e   : > { %v1186_v19 = vadd.f32 %v1173_v52, %v1155_v16  ;;  %v1157_v20 = vpop.f32.mrb[7].mxu0  ;;  %4068 = vmatprep.subr.bf16.mxu1 %v4551_v21  ;;  %v3414_v16 = vld [vmem:[%s6210_s5 + $0xb0] sm:$0xff] }
 0x16f   : > { %v1187_v24 = vadd.f32 %v1177_v53, %v1157_v20  ;;  %3379 = vmatprep.mubr.msk.f32.mxu1 %vm1217_vm1, %v1193_v15  ;;  %v3419_v20 = vld [vmem:[%s6210_s5 + $0xd8] sm:$0xff] }
 0x170   : > { %1305 = vmatmul.mubr.f32.gmra.mrb[4].mxu1 %v1192_v18  ;;  %v1194_v27 = vmax.f32 %v1186_v19, 0.0  ;;  %v4116_v23 = vpack.c.bf16 %v3421_v22, %v3419_v20  ;;  %v2221_v20 = vld [vmem:[%s6212_s7 + $0x80] sm:$0xff]  ;;  %v2222_v22 = vld [vmem:[%s6212_s7 + $0x88] sm:$0xff] }
 0x171   : > { %v1195_v25 = vmax.f32 %v1187_v24, 0.0  ;;  %4070 = vmatpush1.bf16.msra.mxu1 %v4069_v17  ;;  %v3416_v17 = vld [vmem:[%s6210_s5 + $0xc0] sm:$0xff]  ;;  %v3418_v24 = vld [vmem:[%s6210_s5 + $0xd0] sm:$0xff] }
 0x172   : > { %4071 = vmatprep.subr.bf16.mxu1 %v4551_v21  ;;  %v4114_v19 = vpack.c.bf16 %v3416_v17, %v3414_v16 }
 0x173   : > { %3380 = vmatprep.mubr.msk.f32.mxu1 %vm1217_vm1, %v1195_v25 }
 0x174   : > { %1310 = vmatmul.mubr.f32.gmra.mrb[6].mxu1 %v1194_v27 }
 0x175   : > { %4073 = vmatpush1.bf16.msra.mxu1 %v4072_v26  ;;  %3402 = vmatprep.mubr.msk.f32.mxu1 %vm1217_vm1, %v1189_v60 }
 0x176   : > { %4074 = vmatprep.subr.bf16.mxu1 %v4551_v21 }
 0x179   : > { %4076 = vmatpush1.bf16.msra.mxu1 %v4075_v30 }
 0x17a   : > { %4077 = vmatprep.subr.bf16.mxu1 %v4551_v21 }
 0x17d   : > { %4079 = vmatpush1.bf16.msra.mxu1 %v4078_v33  ;;  %v3427_v33 = vld [vmem:[%s6210_s5 + $0x118] sm:$0xff] }
 0x17e   : > { %4080 = vmatprep.subr.bf16.mxu1 %v4551_v21  ;;  %v4124_v35 = vpack.c.bf16 %v3429_v34, %v3427_v33  ;;  %v1615_v33 = vld [vmem:[%s6210_s5 + $0x48] sm:$0xff]  ;;  %v1617_v34 = vld [vmem:[%s6210_s5 + $0x58] sm:$0xff] }
 0x181   : > { %4082 = vmatpush1.bf16.msra.mxu1 %v4081_v36  ;;  %v3426_v36 = vld [vmem:[%s6210_s5 + $0x110] sm:$0xff] }
 0x182   : > { %4083 = vmatprep.subr.bf16.mxu1 %v4551_v21  ;;  %v4126_v38 = vpack.c.bf16 %v3428_v37, %v3426_v36  ;;  %v4140_v36 = vpack.c.bf16 %v1617_v34, %v1615_v33  ;;  %v1614_v37 = vld [vmem:[%s6210_s5 + $0x40] sm:$0xff]  ;;  %v3475_v33 = vld [vmem:[%s6210_s5 + $0x238] sm:$0xff]  ;;  %v3477_v34 = vld [vmem:[%s6210_s5 + $0x248] sm:$0xff] }
 0x185   : > { %4085 = vmatpush1.bf16.msra.mxu1 %v4084_v39  ;;  %v3431_v39 = vld [vmem:[%s6210_s5 + $0x138] sm:$0xff] }
 0x186   : > { %4086 = vmatprep.subr.bf16.mxu1 %v4551_v21  ;;  %v4128_v41 = vpack.c.bf16 %v3433_v40, %v3431_v39  ;;  %v1619_v40 = vld [vmem:[%s6210_s5 + $0x68] sm:$0xff] }
 0x189   : > { %4088 = vmatpush1.bf16.msra.mxu1 %v4087_v42  ;;  %v3430_v42 = vld [vmem:[%s6210_s5 + $0x130] sm:$0xff] }
 0x18a   : > { %4089 = vmatprep.subr.bf16.mxu1 %v4551_v21  ;;  %v4130_v44 = vpack.c.bf16 %v3432_v43, %v3430_v42 }
 0x18d   : > { %4091 = vmatpush1.bf16.msra.mxu1 %v4090_v45  ;;  %v3435_v45 = vld [vmem:[%s6210_s5 + $0x158] sm:$0xf] }
 0x18e   : > { %1377 = vmatprep.subr.mxu1 %v4550_v7 }
 0x191   : > { %1378 = vmatpush1.msra.mxu1 %v3401_v46  ;;  %v1607_v46 = vld [vmem:[%s6210_s5 + $0x8] sm:$0xff] }
 0x192   : > { %1402 = vmatmul.mubr.f32.vlgmr.msra.gmra.mrb[8].mxu1 %v1188_v63 }
 0x193   : > { %3403 = vmatprep.mubr.msk.f32.mxu1 %vm1217_vm1, %v1191_v5 }
 0x196   : > { %1407 = vmatmul.mubr.f32.gmra.mrb[10].mxu1 %v1190_v9 }
 0x197   : > { %3404 = vmatprep.mubr.msk.f32.mxu1 %vm1217_vm1, %v1193_v15  ;;  %v4112_v15 = vpack.c.bf16 %v3417_v14, %v3415_v13  ;;  %v2219_v14 = vld [vmem:[%s6212_s7 + $0x70] sm:$0xff] }
 0x19a   : > { %1412 = vmatmul.mubr.f32.gmra.mrb[12].mxu1 %v1192_v18  ;;  %v3410_v18 = vld [vmem:[%s6209_s4 + $0x18] sm:$0x3f] }
 0x19b   : > { %3405 = vmatprep.mubr.msk.f32.mxu1 %vm1217_vm1, %v1195_v25  ;;  %v3420_v25 = vld [vmem:[%s6210_s5 + $0xe0] sm:$0xff] }
 0x19c   : > { %v4118_v26 = vpack.c.bf16 %v3420_v25, %v3418_v24  ;;  %v1608_v24 = vld [vmem:[%s6210_s5 + $0x10] sm:$0xff]  ;;  %v1611_v25 = vld [vmem:[%s6210_s5 + $0x28] sm:$0xff] }
 0x19e   : > { %1417 = vmatmul.mubr.f32.gmra.mrb[14].mxu1 %v1194_v27  ;;  %v3423_v27 = vld [vmem:[%s6210_s5 + $0xf8] sm:$0xff] }
 0x19f   : > { %3711 = vmatprep.mubr.msk.f32.mxu1 %vm1428_vm2, %v1426_v47  ;;  %v4120_v30 = vpack.c.bf16 %v3425_v28, %v3423_v27  ;;  %v1609_v47 = vld [vmem:[%s6210_s5 + $0x18] sm:$0xff]  ;;  %v4237_v27 = vpack.c.bf16 %v2222_v22, %v2221_v20  ;;  %v3461_v20 = vld [vmem:[%s6210_s5 + $0x1e8] sm:$0xff] }
 0x1a0   : > { %v3463_v22 = vld [vmem:[%s6210_s5 + $0x1f8] sm:$0xff] }
 0x23b   : > { %v1296_v50 = vpop.f32.mrb[0].mxu1 }
 0x23c   : > { %v1298_v52 = vpop.f32.mrb[1].mxu1 }
 0x23d   : > { %v4132_v52 = vpack.c.bf16 %v1609_v47, %v1607_v46  ;;  %v1623_v46 = vld [vmem:[%s6210_s5 + $0x88] sm:$0xff]  ;;  %v1625_v47 = vld [vmem:[%s6210_s5 + $0x98] sm:$0xff] }
 0x23f   : > { %v1301_v53 = vpop.f32.mrb[2].mxu1 }
 0x240   : > { %v1303_v54 = vpop.f32.mrb[3].mxu1 }
 0x241   : > { %v2206_v54 = vld [vmem:[%s6212_s7 + $0x8] sm:$0xff] }
 0x243   : > { %v1306_v55 = vpop.f32.mrb[4].mxu1 }
 0x244   : > { %v1308_v56 = vpop.f32.mrb[5].mxu1 }
 0x247   : > { %v1311_v57 = vpop.f32.mrb[6].mxu1 }
 0x248   : > { %v1313_v58 = vpop.f32.mrb[7].mxu1 }
 0x265   : > { %v1403_v59 = vpop.f32.mrb[8].mxu1 }
 0x266   : > { %v1422_v60 = vmax.f32 %v1296_v50, %v1403_v59  ;;  %v1405_v61 = vpop.f32.mrb[9].mxu1  ;;  %v3434_v50 = vld [vmem:[%s6210_s5 + $0x150] sm:$0xf]  ;;  %v2209_v59 = vld [vmem:[%s6212_s7 + $0x20] sm:$0xff] }
 0x269   : > { %v1408_v62 = vpop.f32.mrb[10].mxu1 }
 0x26a   : > { %v1423_v63 = vmax.f32 %v1301_v53, %v1408_v62  ;;  %v1410_v0 = vpop.f32.mrb[11].mxu1  ;;  %v2205_v53 = vld [vmem:[%s6212_s7] sm:$0xff]  ;;  %v2211_v62 = vld [vmem:[%s6212_s7 + $0x30] sm:$0xff] }
 0x26b   : > { %v4213_v56 = vpack.c.bf16 %v2206_v54, %v2205_v53  ;;  %v1622_v53 = vld [vmem:[%s6210_s5 + $0x80] sm:$0xff]  ;;  %v1624_v54 = vld [vmem:[%s6210_s5 + $0x90] sm:$0xff] }
 0x26c   : > { %v4092_v1 = vpack.c.bf16 %v1423_v63, %v1422_v60  ;;  %v2210_v60 = vld [vmem:[%s6212_s7 + $0x28] sm:$0xff]  ;;  %v2212_v63 = vld [vmem:[%s6212_s7 + $0x38] sm:$0xff] }
 0x26d   : > { %v1413_v2 = vpop.f32.mrb[12].mxu1  ;;  %4214 = vmatpush1.bf16.msra.mxu0 %v4213_v56  ;;  %v4219_v61 = vpack.c.bf16 %v2210_v60, %v2209_v59  ;;  %v4222_v0 = vpack.c.bf16 %v2212_v63, %v2211_v62  ;;  %v1627_v56 = vld [vmem:[%s6210_s5 + $0xa8] sm:$0xf]  ;;  %v3444_v59 = vld [vmem:[%s6210_s5 + $0x160] sm:$0xff]  ;;  %v3446_v60 = vld [vmem:[%s6210_s5 + $0x170] sm:$0xff] }
 0x26e   : > { %v1424_v3 = vmax.f32 %v1306_v55, %v1413_v2  ;;  %v1415_v4 = vpop.f32.mrb[13].mxu1  ;;  %4093 = vmatprep.subr.bf16.mxu1 %v4092_v1  ;;  %v2207_v55 = vld [vmem:[%s6212_s7 + $0x10] sm:$0xff]  ;;  %4215 = vmatprep.subr.bf16.mxu0 %v4551_v21  ;;  %v2214_v2 = vld [vmem:[%s6212_s7 + $0x48] sm:$0xff]  ;;  %v3451_v62 = vld [vmem:[%s6210_s5 + $0x198] sm:$0xff] }
 0x26f   : > { %4095 = vmatpush3.bf16.msra.mxu1 %v4092_v1  ;;  %v1626_v63 = vld [vmem:[%s6210_s5 + $0xa0] sm:$0xf] }
 0x271   : > { %v1418_v5 = vpop.f32.mrb[14].mxu1 }
 0x272   : > { %v1425_v6 = vmax.f32 %v1311_v57, %v1418_v5  ;;  %v1420_v8 = vpop.f32.mrb[15].mxu1  ;;  %v2208_v57 = vld [vmem:[%s6212_s7 + $0x18] sm:$0xff]  ;;  %v2215_v5 = vld [vmem:[%s6212_s7 + $0x50] sm:$0xff] }
 0x273   : > { %v4216_v58 = vpack.c.bf16 %v2208_v57, %v2207_v55  ;;  %v4150_v55 = vpack.c.bf16 %v1624_v54, %v1622_v53  ;;  %v3445_v57 = vld [vmem:[%s6210_s5 + $0x168] sm:$0xff] }
 0x274   : > { %v4096_v10 = vpack.c.bf16 %v1425_v6, %v1424_v3  ;;  %v2216_v6 = vld [vmem:[%s6212_s7 + $0x58] sm:$0xff]  ;;  %v3485_v53 = vld [vmem:[%s6210_s5 + $0x288] sm:$0xff] }
 0x275   : > { %4217 = vmatpush1.bf16.msra.mxu0 %v4216_v58  ;;  %v4228_v9 = vpack.c.bf16 %v2216_v6, %v2215_v5  ;;  %v3447_v58 = vld [vmem:[%s6210_s5 + $0x178] sm:$0xff]  ;;  %v3453_v6 = vld [vmem:[%s6210_s5 + $0x1a8] sm:$0xff] }
 0x276   : > { %4098 = vmatprep.subr.msk.bf16.mxu1 %vm5307_vm5, %v4096_v10  ;;  %4218 = vmatprep.subr.bf16.mxu0 %v4551_v21 }
 0x277   : > { %4101 = vmatpush3.bf16.msk.msra.mxu1 %vm5307_vm5, %v4096_v10 }
 0x278   : > { %4103 = vmatprep.subr.bf16.mxu1 %v4092_v1 }
 0x279   : > { %4220 = vmatpush1.bf16.msra.mxu0 %v4219_v61  ;;  %v3449_v61 = vld [vmem:[%s6210_s5 + $0x188] sm:$0xff] }
 0x27a   : > { %3712 = vmatmul.mubr.msk.f32.vlgmr.msra.gmra.mrb[16].mxu1 %vm1428_vm2, %v1427_v11  ;;  %4221 = vmatprep.subr.bf16.mxu0 %v4551_v21  ;;  %v2218_v11 = vld [vmem:[%s6212_s7 + $0x68] sm:$0xff] }
 0x27b   : > { %4105 = vmatpush3.bf16.msra.mxu1 %v4092_v1  ;;  %3722 = vmatprep.mubr.msk.f32.mxu1 %vm1428_vm2, %v3409_v12  ;;  %v2213_v1 = vld [vmem:[%s6212_s7 + $0x40] sm:$0xff] }
 0x27c   : > { %4108 = vmatprep.subr.msk.bf16.mxu1 %vm5307_vm5, %v4096_v10  ;;  %v4225_v3 = vpack.c.bf16 %v2214_v2, %v2213_v1  ;;  %v4154_v1 = vpack.c.bf16 %v3446_v60, %v3444_v59  ;;  %v4156_v2 = vpack.c.bf16 %v3451_v62, %v3449_v61  ;;  %v3489_v59 = vld [vmem:[%s6210_s5 + $0x2a8] sm:$0xff]  ;;  %v3486_v62 = vld [vmem:[%s6210_s5 + $0x290] sm:$0xff] }
 0x27d   : > { %4223 = vmatpush1.bf16.msra.mxu0 %v4222_v0  ;;  %v4152_v0 = vpack.c.bf16 %v3447_v58, %v3445_v57  ;;  %v3484_v57 = vld [vmem:[%s6210_s5 + $0x280] sm:$0xff]  ;;  %v3487_v58 = vld [vmem:[%s6210_s5 + $0x298] sm:$0xff] }
 0x27e   : > { %4224 = vmatprep.subr.bf16.mxu0 %v4551_v21  ;;  %v4188_v61 = vpack.c.bf16 %v3489_v59, %v3487_v58  ;;  %v3526_v59 = vld [vmem:[%s6212_s7 + $0xb0] sm:$0xff] }
 0x27f   : > { %4111 = vmatpush3.bf16.msk.msra.mxu1 %vm5307_vm5, %v4096_v10  ;;  %v2217_v10 = vld [vmem:[%s6212_s7 + $0x60] sm:$0xff] }
 0x280   : > { %4113 = vmatprep.subr.bf16.mxu1 %v4112_v15  ;;  %v4231_v12 = vpack.c.bf16 %v2218_v11, %v2217_v10  ;;  %v2220_v15 = vld [vmem:[%s6212_s7 + $0x78] sm:$0xff]  ;;  %v3452_v11 = vld [vmem:[%s6210_s5 + $0x1a0] sm:$0xff] }
 0x281   : > { %4226 = vmatpush1.bf16.msra.mxu0 %v4225_v3  ;;  %v3448_v3 = vld [vmem:[%s6210_s5 + $0x180] sm:$0xff] }
 0x282   : > { %3723 = vmatmul.mubr.msk.f32.vlgmr.msra.gmra.mrb[18].mxu1 %vm1428_vm2, %v3410_v18  ;;  %4227 = vmatprep.subr.bf16.mxu0 %v4551_v21 }
 0x283   : > { %4115 = vmatpush1.bf16.msra.mxu1 %v4114_v19  ;;  %1729 = vmatprep.mubr.f32.mxu1 %v4550_v7  ;;  %v4234_v19 = vpack.c.bf16 %v2220_v15, %v2219_v14  ;;  %v3457_v14 = vld [vmem:[%s6210_s5 + $0x1c8] sm:$0xff]  ;;  %v3459_v15 = vld [vmem:[%s6210_s5 + $0x1d8] sm:$0xff] }
 0x284   : > { %4117 = vmatprep.subr.bf16.mxu1 %v4116_v23  ;;  %v1606_v23 = vld [vmem:[%s6210_s5] sm:$0xff] }
 0x285   : > { %4229 = vmatpush1.bf16.msra.mxu0 %v4228_v9  ;;  %v4134_v28 = vpack.c.bf16 %v1608_v24, %v1606_v23  ;;  %v4168_v24 = vpack.c.bf16 %v3463_v22, %v3461_v20  ;;  %v3504_v20 = vld [vmem:[%s6210_s5 + $0x300] sm:$0xff]  ;;  %v3506_v22 = vld [vmem:[%s6210_s5 + $0x310] sm:$0xff] }
 0x286   : > { %4230 = vmatprep.subr.bf16.mxu0 %v4551_v21 }
 0x287   : > { %4119 = vmatpush1.bf16.msra.mxu1 %v4118_v26  ;;  %v1613_v26 = vld [vmem:[%s6210_s5 + $0x38] sm:$0xff] }
 0x288   : > { %4121 = vmatprep.subr.bf16.mxu1 %v4120_v30  ;;  %v4136_v29 = vpack.c.bf16 %v1613_v26, %v1611_v25  ;;  %v1610_v30 = vld [vmem:[%s6210_s5 + $0x20] sm:$0xff]  ;;  %v3462_v26 = vld [vmem:[%s6210_s5 + $0x1f0] sm:$0xff] }
 0x289   : > { %4232 = vmatpush1.bf16.msra.mxu0 %v4231_v12  ;;  %v3454_v12 = vld [vmem:[%s6210_s5 + $0x1b0] sm:$0xff]  ;;  %v3460_v25 = vld [vmem:[%s6210_s5 + $0x1e0] sm:$0xff] }
 0x28a   : > { %4233 = vmatprep.subr.bf16.mxu0 %v4551_v21 }
 0x28b   : > { %4123 = vmatpush1.bf16.msra.mxu1 %v4122_v32 }
 0x28c   : > { %4125 = vmatprep.subr.bf16.mxu1 %v4124_v35  ;;  %v4138_v35 = vpack.c.bf16 %v1612_v31, %v1610_v30  ;;  %v3473_v30 = vld [vmem:[%s6210_s5 + $0x228] sm:$0xff]  ;;  %v3470_v31 = vld [vmem:[%s6210_s5 + $0x210] sm:$0xff] }
 0x28d   : > { %4235 = vmatpush1.bf16.msra.mxu0 %v4234_v19  ;;  %v3458_v19 = vld [vmem:[%s6210_s5 + $0x1d0] sm:$0xff] }
 0x28e   : > { %4236 = vmatprep.subr.bf16.mxu0 %v4551_v21 }
 0x28f   : > { %4127 = vmatpush1.bf16.msra.mxu1 %v4126_v38  ;;  %v1616_v38 = vld [vmem:[%s6210_s5 + $0x50] sm:$0xff] }
 0x290   : > { %4129 = vmatprep.subr.bf16.mxu1 %v4128_v41  ;;  %v1621_v41 = vld [vmem:[%s6210_s5 + $0x78] sm:$0xff]  ;;  %v4142_v42 = vpack.c.bf16 %v1616_v38, %v1614_v37  ;;  %v4176_v38 = vpack.c.bf16 %v3477_v34, %v3475_v33  ;;  %v3512_v34 = vld [vmem:[%s6210_s5 + $0x340] sm:$0xff] }
 0x291   : > { %4238 = vmatpush1.bf16.msra.mxu0 %v4237_v27  ;;  %v4144_v43 = vpack.c.bf16 %v1621_v41, %v1619_v40  ;;  %v4170_v27 = vpack.c.bf16 %v3462_v26, %v3460_v25  ;;  %v3476_v40 = vld [vmem:[%s6210_s5 + $0x240] sm:$0xff]  ;;  %v3511_v25 = vld [vmem:[%s6210_s5 + $0x338] sm:$0xff]  ;;  %v4202_v26 = vpack.c.bf16 %v3506_v22, %v3504_v20  ;;  %v3541_v22 = vld [vmem:[%s6212_s7 + $0x128] sm:$0xff] }
 0x292   : > { %4239 = vmatprep.subr.bf16.mxu0 %v4551_v21  ;;  %v3540_v20 = vld [vmem:[%s6212_s7 + $0x120] sm:$0xff] }
 0x293   : > { %4131 = vmatpush1.bf16.msra.mxu1 %v4130_v44  ;;  %v1618_v44 = vld [vmem:[%s6210_s5 + $0x60] sm:$0xff] }
 0x294   : > { %3436 = vmatprep.subr.msk.mxu1 %vm1435_vm3, %v3435_v45  ;;  %v1620_v45 = vld [vmem:[%s6210_s5 + $0x70] sm:$0xff] }
 0x297   : > { %3437 = vmatpush1.msk.msra.mxu1 %vm1435_vm3, %v3434_v50  ;;  %v4146_v50 = vpack.c.bf16 %v1620_v45, %v1618_v44 }
 0x298   : > { %4133 = vmatprep.subr.bf16.mxu1 %v4132_v52  ;;  %v4148_v52 = vpack.c.bf16 %v1625_v47, %v1623_v46  ;;  %v3478_v46 = vld [vmem:[%s6210_s5 + $0x250] sm:$0xff]  ;;  %v3480_v47 = vld [vmem:[%s6210_s5 + $0x260] sm:$0xff] }
 0x299   : > { %v4182_v54 = vpack.c.bf16 %v3480_v47, %v3478_v46 }
 0x34d   : > { %v3713_v4 = vpop.f32.mrb[16].mxu1 }
 0x34e   : > { %v1505_v8 = vpop.f32.mrb[17].mxu1 }
 0x355   : > { %v3724_v13 = vpop.f32.mrb[18].mxu1 }
 0x356   : > { %v1599_v16 = vmax.f32 %v3713_v4, %v3724_v13  ;;  %v1589_v17 = vpop.f32.mrb[19].mxu1  ;;  %v3450_v4 = vld [vmem:[%s6210_s5 + $0x190] sm:$0xff] }
 0x357   : > { %v1598_v18 = vmax.f32 %v1505_v8, %v1589_v17  ;;  %v3455_v8 = vld [vmem:[%s6210_s5 + $0x1b8] sm:$0xff]  ;;  %v4158_v9 = vpack.c.bf16 %v3450_v4, %v3448_v3  ;;  %v4164_v17 = vpack.c.bf16 %v3459_v15, %v3457_v14  ;;  %v3496_v4 = vld [vmem:[%s6210_s5 + $0x2c0] sm:$0xff]  ;;  %v3502_v14 = vld [vmem:[%s6210_s5 + $0x2f0] sm:$0xff] }
 0x358   : > { %1603 = vst.msk [vmem:[#allocation2 + $0x8] sm:$0x3f] %vm1602_vm6, %v1599_v16  ;;  %v4160_v10 = vpack.c.bf16 %v3455_v8, %v3453_v6  ;;  %v4162_v16 = vpack.c.bf16 %v3454_v12, %v3452_v11  ;;  %v3499_v3 = vld [vmem:[%s6210_s5 + $0x2d8] sm:$0xff]  ;;  %v3501_v6 = vld [vmem:[%s6210_s5 + $0x2e8] sm:$0xff] }
 0x359   : > { %1601 = vst.msk [vmem:[#allocation2] sm:$0xff] %vm1600_vm7, %v1598_v18  ;;  %v3456_v18 = vld [vmem:[%s6210_s5 + $0x1c0] sm:$0xff]  ;;  %v3503_v8 = vld [vmem:[%s6210_s5 + $0x2f8] sm:$0xff] }
 0x35a   : > { %v4166_v23 = vpack.c.bf16 %v3458_v19, %v3456_v18  ;;  %v4196_v12 = vpack.c.bf16 %v3503_v8, %v3501_v6  ;;  %v3532_v8 = vld [vmem:[%s6212_s7 + $0xe0] sm:$0xff] }
 0x35f   : > { %v1629_v39 = vld [vmem:[#allocation2 + $0x9] sm:$0x3] }
 0x360   : > { %v1628_v32 = vld [vmem:[#allocation2 + $0x1] sm:$0xff] }
 0x361   : > { %3438 = vmatmul.mubr.msk.f32.vlgmr.msra.gmra.mrb[20].mxu1 %vm1600_vm7, %v1628_v32  ;;  %v1604_v5 = vld [vmem:[#allocation2] sm:$0xff]  ;;  %v1605_v13 = vld [vmem:[#allocation2 + $0x8] sm:$0x3] }
 0x362   : > { %4135 = vmatpush1.bf16.msra.mxu1 %v4134_v28  ;;  %1735 = vmatprep.mubr.f32.mxu1 %v4550_v7  ;;  %v3465_v28 = vld [vmem:[%s6210_s5 + $0x208] sm:$0xf]  ;;  %v3472_v32 = vld [vmem:[%s6210_s5 + $0x220] sm:$0xff] }
 0x363   : > { %4137 = vmatprep.subr.bf16.mxu1 %v4136_v29  ;;  %v3471_v29 = vld [vmem:[%s6210_s5 + $0x218] sm:$0xff]  ;;  %v4174_v37 = vpack.c.bf16 %v3472_v32, %v3470_v31  ;;  %v1831_v41 = vld [vmem:[#allocation2 + $0x2] sm:$0xff] }
 0x364   : > { %v1949_v15 = vld [vmem:[#allocation2 + $0x3] sm:$0xff]  ;;  %v3515_v31 = vld [vmem:[%s6210_s5 + $0x358] sm:$0xff] }
 0x365   : > { %3439 = vmatmul.mubr.msk.f32.gmra.mrb[22].mxu1 %vm1600_vm7, %v1629_v39  ;;  %v3474_v39 = vld [vmem:[%s6210_s5 + $0x230] sm:$0xff] }
 0x366   : > { %4139 = vmatpush1.bf16.msra.mxu1 %v4138_v35  ;;  %1818 = vmatprep.mubr.f32.mxu1 %v4550_v7  ;;  %v3464_v35 = vld [vmem:[%s6210_s5 + $0x200] sm:$0xf]  ;;  %v4178_v44 = vpack.c.bf16 %v3476_v40, %v3474_v39  ;;  %v2067_v39 = vld [vmem:[#allocation2 + $0x4] sm:$0xff]  ;;  %v2068_v40 = vld [vmem:[#allocation2 + $0xc] sm:$0x3] }
 0x367   : > { %4141 = vmatprep.subr.bf16.mxu1 %v4140_v36  ;;  %v4172_v36 = vpack.c.bf16 %v3473_v30, %v3471_v29  ;;  %v3510_v29 = vld [vmem:[%s6210_s5 + $0x330] sm:$0xff]  ;;  %v3513_v30 = vld [vmem:[%s6210_s5 + $0x348] sm:$0xff] }
 0x368   : > { %v4208_v33 = vpack.c.bf16 %v3515_v31, %v3513_v30  ;;  %v2565_v30 = vld [vmem:[%s6214_s9 + $0x10] sm:$0xff]  ;;  %v2566_v31 = vld [vmem:[%s6214_s9 + $0x18] sm:$0xff] }
 0x36a   : > { %4143 = vmatpush1.bf16.msra.mxu1 %v4142_v42  ;;  %v3479_v42 = vld [vmem:[%s6210_s5 + $0x258] sm:$0xff] }
 0x36b   : > { %4145 = vmatprep.subr.bf16.mxu1 %v4144_v43  ;;  %v3481_v43 = vld [vmem:[%s6210_s5 + $0x268] sm:$0xff] }
 0x36c   : > { %v4180_v45 = vpack.c.bf16 %v3481_v43, %v3479_v42  ;;  %v2224_v42 = vld [vmem:[%s6212_s7 + $0x98] sm:$0xff] }
 0x36e   : > { %4147 = vmatpush1.bf16.msra.mxu1 %v4146_v50  ;;  %v1832_v50 = vld [vmem:[#allocation2 + $0xa] sm:$0x3] }
 0x36f   : > { %4149 = vmatprep.subr.bf16.mxu1 %v4148_v52  ;;  %v3483_v52 = vld [vmem:[%s6210_s5 + $0x278] sm:$0xff] }
 0x372   : > { %4151 = vmatpush1.bf16.msra.mxu1 %v4150_v55  ;;  %v4184_v55 = vpack.c.bf16 %v3485_v53, %v3483_v52  ;;  %v3524_v53 = vld [vmem:[%s6212_s7 + $0xa0] sm:$0xff] }
 0x373   : > { %3440 = vmatprep.subr.msk.mxu1 %vm1435_vm3, %v1627_v56  ;;  %v3482_v56 = vld [vmem:[%s6210_s5 + $0x270] sm:$0xff] }
 0x374   : > { %v4186_v60 = vpack.c.bf16 %v3484_v57, %v3482_v56 }
 0x376   : > { %3441 = vmatpush1.msk.msra.mxu1 %vm1435_vm3, %v1626_v63  ;;  %v3488_v63 = vld [vmem:[%s6210_s5 + $0x2a0] sm:$0xff] }
 0x377   : > { %3442 = vmatmul.mubr.msk.f32.vlgmr.msra.gmra.mrb[20].mxu1 %vm1600_vm7, %v1604_v5  ;;  %4153 = vmatprep.subr.bf16.mxu1 %v4152_v0  ;;  %v4190_v0 = vpack.c.bf16 %v3488_v63, %v3486_v62  ;;  %v3498_v5 = vld [vmem:[%s6210_s5 + $0x2d0] sm:$0xff] }
 0x378   : > { %4155 = vmatpush1.bf16.msra.mxu1 %v4154_v1  ;;  %1824 = vmatprep.mubr.f32.mxu1 %v4550_v7  ;;  %v3491_v1 = vld [vmem:[%s6210_s5 + $0x2b8] sm:$0xf]  ;;  %v4194_v11 = vpack.c.bf16 %v3498_v5, %v3496_v4  ;;  %v3530_v4 = vld [vmem:[%s6212_s7 + $0xd0] sm:$0xff] }
 0x379   : > { %4157 = vmatprep.subr.bf16.mxu1 %v4156_v2  ;;  %v3497_v2 = vld [vmem:[%s6210_s5 + $0x2c8] sm:$0xff]  ;;  %v3531_v5 = vld [vmem:[%s6212_s7 + $0xd8] sm:$0xff] }
 0x37a   : > { %v4252_v6 = vpack.c.bf16 %v3531_v5, %v3530_v4  ;;  %v2572_v4 = vld [vmem:[%s6214_s9 + $0x48] sm:$0xff] }
 0x37b   : > { %3443 = vmatmul.mubr.msk.f32.gmra.mrb[22].mxu1 %vm1600_vm7, %v1605_v13  ;;  %v3500_v13 = vld [vmem:[%s6210_s5 + $0x2e0] sm:$0xff] }
 0x37c   : > { %4159 = vmatpush1.bf16.msra.mxu1 %v4158_v9  ;;  %1932 = vmatprep.mubr.f32.mxu1 %v4550_v7  ;;  %v3490_v9 = vld [vmem:[%s6210_s5 + $0x2b0] sm:$0xf]  ;;  %v4198_v18 = vpack.c.bf16 %v3502_v14, %v3500_v13  ;;  %v3536_v14 = vld [vmem:[%s6212_s7 + $0x100] sm:$0xff] }
 0x37d   : > { %4161 = vmatprep.subr.bf16.mxu1 %v4160_v10  ;;  %v4192_v10 = vpack.c.bf16 %v3499_v3, %v3497_v2  ;;  %v3529_v2 = vld [vmem:[%s6212_s7 + $0xc8] sm:$0xff] }
 0x380   : > { %4163 = vmatpush1.bf16.msra.mxu1 %v4162_v16  ;;  %v3505_v16 = vld [vmem:[%s6210_s5 + $0x308] sm:$0xff] }
 0x381   : > { %4165 = vmatprep.subr.bf16.mxu1 %v4164_v17  ;;  %v3507_v17 = vld [vmem:[%s6210_s5 + $0x318] sm:$0xff] }
 0x382   : > { %v4200_v19 = vpack.c.bf16 %v3507_v17, %v3505_v16  ;;  %v3538_v17 = vld [vmem:[%s6212_s7 + $0x110] sm:$0xff] }
 0x384   : > { %4167 = vmatpush1.bf16.msra.mxu1 %v4166_v23  ;;  %v1950_v23 = vld [vmem:[#allocation2 + $0xb] sm:$0x3] }
 0x385   : > { %4169 = vmatprep.subr.bf16.mxu1 %v4168_v24  ;;  %v3509_v24 = vld [vmem:[%s6210_s5 + $0x328] sm:$0xff] }
 0x388   : > { %4171 = vmatpush1.bf16.msra.mxu1 %v4170_v27  ;;  %v4204_v27 = vpack.c.bf16 %v3511_v25, %v3509_v24  ;;  %v3542_v24 = vld [vmem:[%s6212_s7 + $0x130] sm:$0xff]  ;;  %v3543_v25 = vld [vmem:[%s6212_s7 + $0x138] sm:$0xff] }
 0x389   : > { %3466 = vmatprep.subr.msk.mxu1 %vm1435_vm3, %v3465_v28  ;;  %v3508_v28 = vld [vmem:[%s6210_s5 + $0x320] sm:$0xff] }
 0x38a   : > { %v4206_v32 = vpack.c.bf16 %v3510_v29, %v3508_v28  ;;  %v2564_v28 = vld [vmem:[%s6214_s9 + $0x8] sm:$0xff] }
 0x38c   : > { %3467 = vmatpush1.msk.msra.mxu1 %vm1435_vm3, %v3464_v35  ;;  %v3514_v35 = vld [vmem:[%s6210_s5 + $0x350] sm:$0xff] }
 0x38d   : > { %3468 = vmatmul.mubr.msk.f32.vlgmr.msra.gmra.mrb[20].mxu1 %vm1600_vm7, %v1831_v41  ;;  %4173 = vmatprep.subr.bf16.mxu1 %v4172_v36  ;;  %v4210_v36 = vpack.c.bf16 %v3514_v35, %v3512_v34  ;;  %v2223_v41 = vld [vmem:[%s6212_s7 + $0x90] sm:$0xff] }
 0x38e   : > { %4175 = vmatpush1.bf16.msra.mxu1 %v4174_v37  ;;  %1938 = vmatprep.mubr.f32.mxu1 %v4550_v7  ;;  %v3517_v37 = vld [vmem:[%s6210_s5 + $0x368] sm:$0xf]  ;;  %v4240_v43 = vpack.c.bf16 %v2224_v42, %v2223_v41 }
 0x38f   : > { %4177 = vmatprep.subr.bf16.mxu1 %v4176_v38  ;;  %v3516_v38 = vld [vmem:[%s6210_s5 + $0x360] sm:$0xf] }
 0x390   : > { %4241 = vmatpush1.bf16.msra.mxu0 %v4240_v43 }
 0x391   : > { %3469 = vmatmul.mubr.msk.f32.gmra.mrb[22].mxu1 %vm1600_vm7, %v1832_v50  ;;  %4242 = vmatprep.subr.bf16.mxu0 %v4551_v21 }
 0x392   : > { %4179 = vmatpush1.bf16.msra.mxu1 %v4178_v44  ;;  %2050 = vmatprep.mubr.f32.mxu1 %v4550_v7  ;;  %v2185_v44 = vld [vmem:[%s6211_s6] sm:$0x3] }
 0x393   : > { %4181 = vmatprep.subr.bf16.mxu1 %v4180_v45  ;;  %v2190_v45 = vrot.slane %v2185_v44, %v1172_v49  ;;  %v2194_v46 = vrot.slane %v2185_v44, %v1176_v51  ;;  %v2405_v44 = vld [vmem:[%s6213_s8] sm:$0x1f] }
 0x396   : > { %4183 = vmatpush1.bf16.msra.mxu1 %v4182_v54  ;;  %v3525_v54 = vld [vmem:[%s6212_s7 + $0xa8] sm:$0xff] }
 0x397   : > { %4185 = vmatprep.subr.bf16.mxu1 %v4184_v55  ;;  %v4243_v49 = vpack.c.bf16 %v3525_v54, %v3524_v53  ;;  %v3554_v53 = vld [vmem:[%s6214_s9 + $0x68] sm:$0xff] }
 0x39a   : > { %4187 = vmatpush1.bf16.msra.mxu1 %v4186_v60  ;;  %v3527_v60 = vld [vmem:[%s6212_s7 + $0xb8] sm:$0xff] }
 0x39b   : > { %4189 = vmatprep.subr.bf16.mxu1 %v4188_v61  ;;  %v4246_v63 = vpack.c.bf16 %v3527_v60, %v3526_v59  ;;  %v3558_v59 = vld [vmem:[%s6214_s9 + $0x88] sm:$0xff]  ;;  %v2569_v60 = vld [vmem:[%s6214_s9 + $0x30] sm:$0xff] }
 0x39e   : > { %4191 = vmatpush1.bf16.msra.mxu1 %v4190_v0 }
 0x39f   : > { %3492 = vmatprep.subr.msk.mxu1 %vm1435_vm3, %v3491_v1  ;;  %v3528_v1 = vld [vmem:[%s6212_s7 + $0xc0] sm:$0xff] }
 0x3a0   : > { %v4249_v3 = vpack.c.bf16 %v3529_v2, %v3528_v1  ;;  %v3560_v1 = vld [vmem:[%s6214_s9 + $0x98] sm:$0xff]  ;;  %v2571_v2 = vld [vmem:[%s6214_s9 + $0x40] sm:$0xff] }
 0x3a1   : > { %v4308_v5 = vpack.c.bf16 %v2572_v4, %v2571_v2  ;;  %v2995_v2 = vld [vmem:[%s6216_s11 + $0x10] sm:$0xff] }
 0x3a2   : > { %3493 = vmatpush1.msk.msra.mxu1 %vm1435_vm3, %v3490_v9  ;;  %v3533_v9 = vld [vmem:[%s6212_s7 + $0xe8] sm:$0xff] }
 0x3a3   : > { %3494 = vmatmul.mubr.msk.f32.vlgmr.msra.gmra.mrb[20].mxu1 %vm1600_vm7, %v1949_v15  ;;  %4193 = vmatprep.subr.bf16.mxu1 %v4192_v10  ;;  %v4255_v10 = vpack.c.bf16 %v3533_v9, %v3532_v8  ;;  %v3537_v15 = vld [vmem:[%s6212_s7 + $0x108] sm:$0xff] }
 0x3a4   : > { %4195 = vmatpush1.bf16.msra.mxu1 %v4194_v11  ;;  %2056 = vmatprep.mubr.f32.mxu1 %v4550_v7  ;;  %v3534_v11 = vld [vmem:[%s6212_s7 + $0xf0] sm:$0xff]  ;;  %v4261_v16 = vpack.c.bf16 %v3537_v15, %v3536_v14  ;;  %v3575_v15 = vld [vmem:[%s6214_s9 + $0xf8] sm:$0xff] }
 0x3a5   : > { %4197 = vmatprep.subr.bf16.mxu1 %v4196_v12  ;;  %v3535_v12 = vld [vmem:[%s6212_s7 + $0xf8] sm:$0xff]  ;;  %v3574_v14 = vld [vmem:[%s6214_s9 + $0xf0] sm:$0xff] }
 0x3a6   : > { %v4258_v13 = vpack.c.bf16 %v3535_v12, %v3534_v11  ;;  %v3563_v12 = vld [vmem:[%s6214_s9 + $0xa0] sm:$0xff] }
 0x3a7   : > { %3495 = vmatmul.mubr.msk.f32.gmra.mrb[22].mxu1 %vm1600_vm7, %v1950_v23  ;;  %v4267_v23 = vpack.c.bf16 %v3541_v22, %v3540_v20  ;;  %v3576_v20 = vld [vmem:[%s6214_s9 + $0x100] sm:$0xff]  ;;  %v3577_v22 = vld [vmem:[%s6214_s9 + $0x108] sm:$0xff] }
 0x3a8   : > { %4199 = vmatpush1.bf16.msra.mxu1 %v4198_v18  ;;  %2168 = vmatprep.mubr.f32.mxu1 %v4550_v7  ;;  %v3539_v18 = vld [vmem:[%s6212_s7 + $0x118] sm:$0xff] }
 0x3a9   : > { %4201 = vmatprep.subr.bf16.mxu1 %v4200_v19  ;;  %v4264_v19 = vpack.c.bf16 %v3539_v18, %v3538_v17  ;;  %v4326_v17 = vpack.c.bf16 %v3575_v15, %v3574_v14  ;;  %v3565_v18 = vld [vmem:[%s6214_s9 + $0xb0] sm:$0xff] }
 0x3aa   : > { %v3003_v15 = vld [vmem:[%s6216_s11 + $0x50] sm:$0xff] }
 0x3ac   : > { %4203 = vmatpush1.bf16.msra.mxu1 %v4202_v26  ;;  %v4270_v26 = vpack.c.bf16 %v3543_v25, %v3542_v24 }
 0x3ad   : > { %4205 = vmatprep.subr.bf16.mxu1 %v4204_v27  ;;  %v2563_v27 = vld [vmem:[%s6214_s9] sm:$0xff] }
 0x3ae   : > { %v4296_v29 = vpack.c.bf16 %v2564_v28, %v2563_v27  ;;  %v3567_v27 = vld [vmem:[%s6214_s9 + $0xc0] sm:$0xff]  ;;  %v3568_v28 = vld [vmem:[%s6214_s9 + $0xc8] sm:$0xff] }
 0x3b0   : > { %4207 = vmatpush1.bf16.msra.mxu1 %v4206_v32  ;;  %v4299_v32 = vpack.c.bf16 %v2566_v31, %v2565_v30  ;;  %v3579_v30 = vld [vmem:[%s6214_s9 + $0x118] sm:$0xff]  ;;  %v4317_v31 = vpack.c.bf16 %v3568_v28, %v3567_v27 }
 0x3b1   : > { %4209 = vmatprep.subr.bf16.mxu1 %v4208_v33  ;;  %v3087_v27 = vld [vmem:[%s6218_s13 + $0x18] sm:$0xff] }
 0x3b4   : > { %4211 = vmatpush1.bf16.msra.mxu1 %v4210_v36 }
 0x3b5   : > { %3518 = vmatprep.subr.msk.mxu1 %vm1435_vm3, %v3517_v37 }
 0x3b8   : > { %3519 = vmatpush1.msk.msra.mxu1 %vm1435_vm3, %v3516_v38 }
 0x3b9   : > { %3520 = vmatmul.mubr.msk.f32.vlgmr.msra.gmra.mrb[20].mxu1 %vm1600_vm7, %v2067_v39  ;;  %4295 = vmatprep.subr.bf16.mxu1 %v4551_v21 }
 0x3ba   : > { %2174 = vmatprep.mubr.f32.mxu1 %v4550_v7  ;;  %4297 = vmatpush3.bf16.msra.mxu1 %v4296_v29  ;;  %v3578_v29 = vld [vmem:[%s6214_s9 + $0x110] sm:$0xff] }
 0x3bb   : > { %4298 = vmatprep.subr.bf16.mxu1 %v4551_v21 }
 0x3bd   : > { %3521 = vmatmul.mubr.msk.f32.gmra.mrb[22].mxu1 %vm1600_vm7, %v2068_v40 }
 0x3be   : > { %3782 = vmatprep.mubr.msk.f32.mxu1 %vm4553_vm9, %v4550_v7  ;;  %4300 = vmatpush3.bf16.msra.mxu1 %v4299_v32  ;;  %v4332_v32 = vpack.c.bf16 %v3579_v30, %v3578_v29  ;;  %v3088_v29 = vld [vmem:[%s6218_s13 + $0x20] sm:$0xff]  ;;  %v3089_v30 = vld [vmem:[%s6218_s13 + $0x28] sm:$0xff] }
 0x3bf   : > { %4301 = vmatprep.subr.bf16.mxu1 %v4551_v21 }
 0x48c   : > { %v2170_v47 = vpop.f32.mrb[20].mxu1 }
 0x48d   : > { %v5770_v50 = vadd.f32 %v2190_v45, %v2170_v47  ;;  %v2172_v52 = vpop.f32.mrb[21].mxu1  ;;  %v3548_v47 = vld [vmem:[%s6213_s8 + $0x8] sm:$0x1f] }
 0x48e   : > { %v2198_v55 = vadd.f32 %v2194_v46, %v2172_v52  ;;  %v3553_v52 = vld [vmem:[%s6214_s9 + $0x60] sm:$0xff] }
 0x48f   : > { %v2201_v48 = vmax.f32 %v5770_v50, 0.0  ;;  %v4284_v54 = vpack.c.bf16 %v3554_v53, %v3553_v52  ;;  %v3588_v52 = vld [vmem:[%s6214_s9 + $0x158] sm:$0xff] }
 0x490   : > { %v2202_v56 = vmax.f32 %v2198_v55, 0.0  ;;  %v2176_v57 = vpop.f32.mrb[22].mxu1  ;;  %v3555_v55 = vld [vmem:[%s6214_s9 + $0x70] sm:$0xff] }
 0x491   : > { %v2199_v51 = vadd.f32 %v2190_v45, %v2176_v57  ;;  %v2178_v58 = vpop.f32.mrb[23].mxu1  ;;  %v3551_v45 = vld [vmem:[%s6214_s9 + $0x50] sm:$0xff]  ;;  %v2567_v57 = vld [vmem:[%s6214_s9 + $0x20] sm:$0xff] }
 0x492   : > { %v2200_v61 = vadd.f32 %v2194_v46, %v2178_v58  ;;  %3522 = vmatprep.mubr.msk.f32.mxu0 %vm2225_vm8, %v2202_v56  ;;  %v3552_v46 = vld [vmem:[%s6214_s9 + $0x58] sm:$0xff]  ;;  %v3557_v58 = vld [vmem:[%s6214_s9 + $0x80] sm:$0xff] }
 0x493   : > { %2297 = vmatmul.mubr.f32.vlgmr.msra.gmra.mrb[8].mxu0 %v2201_v48  ;;  %v2203_v0 = vmax.f32 %v2199_v51, 0.0  ;;  %v4281_v50 = vpack.c.bf16 %v3552_v46, %v3551_v45  ;;  %v3585_v45 = vld [vmem:[%s6214_s9 + $0x140] sm:$0xff]  ;;  %v3586_v46 = vld [vmem:[%s6214_s9 + $0x148] sm:$0xff] }
 0x494   : > { %v2204_v62 = vmax.f32 %v2200_v61, 0.0  ;;  %4244 = vmatpush1.bf16.msra.mxu0 %v4243_v49  ;;  %v4290_v61 = vpack.c.bf16 %v3558_v59, %v3557_v58  ;;  %v3593_v59 = vld [vmem:[%s6214_s9 + $0x180] sm:$0xff] }
 0x495   : > { %4245 = vmatprep.subr.bf16.mxu0 %v4551_v21 }
 0x496   : > { %3523 = vmatprep.mubr.msk.f32.mxu0 %vm2225_vm8, %v2204_v62 }
 0x497   : > { %2302 = vmatmul.mubr.f32.gmra.mrb[10].mxu0 %v2203_v0 }
 0x498   : > { %4247 = vmatpush1.bf16.msra.mxu0 %v4246_v63  ;;  %3544 = vmatprep.mubr.msk.f32.mxu0 %vm2225_vm8, %v2202_v56  ;;  %v3556_v56 = vld [vmem:[%s6214_s9 + $0x78] sm:$0xff] }
 0x499   : > { %4248 = vmatprep.subr.bf16.mxu0 %v4551_v21  ;;  %v4287_v49 = vpack.c.bf16 %v3556_v56, %v3555_v55  ;;  %v3589_v56 = vld [vmem:[%s6214_s9 + $0x160] sm:$0xff] }
 0x49c   : > { %4250 = vmatpush1.bf16.msra.mxu0 %v4249_v3 }
 0x49d   : > { %4251 = vmatprep.subr.bf16.mxu0 %v4551_v21 }
 0x4a0   : > { %4253 = vmatpush1.bf16.msra.mxu0 %v4252_v6 }
 0x4a1   : > { %4254 = vmatprep.subr.bf16.mxu0 %v4551_v21 }
 0x4a4   : > { %4256 = vmatpush1.bf16.msra.mxu0 %v4255_v10 }
 0x4a5   : > { %4257 = vmatprep.subr.bf16.mxu0 %v4551_v21 }
 0x4a8   : > { %4259 = vmatpush1.bf16.msra.mxu0 %v4258_v13  ;;  %v3564_v13 = vld [vmem:[%s6214_s9 + $0xa8] sm:$0xff] }
 0x4a9   : > { %4260 = vmatprep.subr.bf16.mxu0 %v4551_v21 }
 0x4ac   : > { %4262 = vmatpush1.bf16.msra.mxu0 %v4261_v16  ;;  %v4311_v16 = vpack.c.bf16 %v3564_v13, %v3563_v12  ;;  %v3001_v12 = vld [vmem:[%s6216_s11 + $0x40] sm:$0xff]  ;;  %v3002_v13 = vld [vmem:[%s6216_s11 + $0x48] sm:$0xff] }
 0x4ad   : > { %4263 = vmatprep.subr.bf16.mxu0 %v4551_v21  ;;  %v4368_v14 = vpack.c.bf16 %v3002_v13, %v3001_v12 }
 0x4b0   : > { %4265 = vmatpush1.bf16.msra.mxu0 %v4264_v19  ;;  %v3566_v19 = vld [vmem:[%s6214_s9 + $0xb8] sm:$0xff] }
 0x4b1   : > { %4266 = vmatprep.subr.bf16.mxu0 %v4551_v21  ;;  %v4314_v25 = vpack.c.bf16 %v3566_v19, %v3565_v18  ;;  %v3005_v18 = vld [vmem:[%s6216_s11 + $0x60] sm:$0xff]  ;;  %v3006_v19 = vld [vmem:[%s6216_s11 + $0x68] sm:$0xff] }
 0x4b4   : > { %4268 = vmatpush1.bf16.msra.mxu0 %v4267_v23 }
 0x4b5   : > { %4269 = vmatprep.subr.bf16.mxu0 %v4551_v21 }
 0x4b8   : > { %4271 = vmatpush1.bf16.msra.mxu0 %v4270_v26  ;;  %v4329_v26 = vpack.c.bf16 %v3577_v22, %v3576_v20  ;;  %v4374_v20 = vpack.c.bf16 %v3006_v19, %v3005_v18  ;;  %v3007_v22 = vld [vmem:[%s6216_s11 + $0x70] sm:$0xff] }
 0x4b9   : > { %4272 = vmatprep.subr.bf16.mxu0 %v4551_v21 }
 0x4bb   : > { %2393 = vmatmul.mubr.f32.vlgmr.msra.gmra.mrb[12].mxu0 %v2201_v48  ;;  %v2568_v48 = vld [vmem:[%s6214_s9 + $0x28] sm:$0xff] }
 0x4bc   : > { %3545 = vmatprep.mubr.msk.f32.mxu0 %vm2225_vm8, %v2204_v62  ;;  %v4302_v51 = vpack.c.bf16 %v2568_v48, %v2567_v57  ;;  %v2570_v62 = vld [vmem:[%s6214_s9 + $0x38] sm:$0xff]  ;;  %v3590_v57 = vld [vmem:[%s6214_s9 + $0x168] sm:$0xff]  ;;  %v3591_v48 = vld [vmem:[%s6214_s9 + $0x170] sm:$0xff] }
 0x4bd   : > { %v4305_v63 = vpack.c.bf16 %v2570_v62, %v2569_v60  ;;  %v3594_v60 = vld [vmem:[%s6214_s9 + $0x188] sm:$0xff] }
 0x4be   : > { %4303 = vmatpush3.bf16.msra.mxu1 %v4302_v51  ;;  %v3592_v51 = vld [vmem:[%s6214_s9 + $0x178] sm:$0xff] }
 0x4bf   : > { %2398 = vmatmul.mubr.f32.gmra.mrb[14].mxu0 %v2203_v0  ;;  %4304 = vmatprep.subr.bf16.mxu1 %v4551_v21  ;;  %v3559_v0 = vld [vmem:[%s6214_s9 + $0x90] sm:$0xff]  ;;  %v4350_v58 = vpack.c.bf16 %v3592_v51, %v3591_v48 }
 0x4c0   : > { %3729 = vmatprep.mubr.msk.f32.mxu0 %vm4553_vm9, %v4550_v7  ;;  %v4293_v3 = vpack.c.bf16 %v3560_v1, %v3559_v0  ;;  %v2994_v0 = vld [vmem:[%s6216_s11 + $0x8] sm:$0xff] }
 0x4c2   : > { %4306 = vmatpush3.bf16.msra.mxu1 %v4305_v63  ;;  %v2993_v63 = vld [vmem:[%s6216_s11] sm:$0xff] }
 0x4c3   : > { %4307 = vmatprep.subr.bf16.mxu1 %v4551_v21  ;;  %v4356_v1 = vpack.c.bf16 %v2994_v0, %v2993_v63 }
 0x4c6   : > { %4309 = vmatpush3.bf16.msra.mxu1 %v4308_v5  ;;  %v2997_v5 = vld [vmem:[%s6216_s11 + $0x20] sm:$0xff] }
 0x4c7   : > { %4325 = vmatprep.subr.bf16.mxu1 %v4551_v21 }
 0x566   : > { %v2298_v33 = vpop.f32.mrb[8].mxu0 }
 0x567   : > { %v2300_v34 = vpop.f32.mrb[9].mxu0 }
 0x568   : > { %v3570_v34 = vld [vmem:[%s6214_s9 + $0xd8] sm:$0xff] }
 0x56a   : > { %v2303_v35 = vpop.f32.mrb[10].mxu0 }
 0x56b   : > { %v2305_v36 = vpop.f32.mrb[11].mxu0 }
 0x56c   : > { %v3581_v36 = vld [vmem:[%s6214_s9 + $0x128] sm:$0xff] }
 0x58e   : > { %v2394_v37 = vpop.f32.mrb[12].mxu0 }
 0x58f   : > { %v2403_v38 = vmax.f32 %v2298_v33, %v2394_v37  ;;  %v2396_v39 = vpop.f32.mrb[13].mxu0  ;;  %v3569_v33 = vld [vmem:[%s6214_s9 + $0xd0] sm:$0xff] }
 0x590   : > { %v4320_v37 = vpack.c.bf16 %v3570_v34, %v3569_v33  ;;  %v3571_v39 = vld [vmem:[%s6214_s9 + $0xe0] sm:$0xff]  ;;  %v3091_v33 = vld [vmem:[%s6218_s13 + $0x38] sm:$0xff] }
 0x592   : > { %v2399_v40 = vpop.f32.mrb[14].mxu0 }
 0x593   : > { %v2404_v41 = vmax.f32 %v2303_v35, %v2399_v40  ;;  %v2401_v42 = vpop.f32.mrb[15].mxu0  ;;  %v3580_v35 = vld [vmem:[%s6214_s9 + $0x120] sm:$0xff]  ;;  %v3572_v40 = vld [vmem:[%s6214_s9 + $0xe8] sm:$0xff] }
 0x594   : > { %v3583_v42 = vld [vmem:[%s6214_s9 + $0x138] sm:$0xff] }
 0x595   : > { %v4273_v43 = vpack.c.bf16 %v2404_v41, %v2403_v38  ;;  %v4335_v38 = vpack.c.bf16 %v3581_v36, %v3580_v35  ;;  %v3582_v41 = vld [vmem:[%s6214_s9 + $0x130] sm:$0xff] }
 0x597   : > { %4275 = vmatpush3.bf16.msk.msra.mxu0 %vm4274_vm11, %v4273_v43 }
 0x598   : > { %4276 = vmatprep.subr.bf16.mxu0 %v4551_v21 }
 0x59a   : > { %3730 = vmatmul.mubr.msk.f32.vlgmr.msra.gmra.mrb[16].mxu0 %vm2406_vm12, %v2405_v44  ;;  %v4338_v44 = vpack.c.bf16 %v3583_v42, %v3582_v41 }
 0x59b   : > { %4279 = vmatpush3.bf16.msk.msra.mxu0 %vm4274_vm11, %v4273_v43  ;;  %3736 = vmatprep.mubr.msk.f32.mxu0 %vm4553_vm9, %v4550_v7  ;;  %v4323_v43 = vpack.c.bf16 %v3572_v40, %v3571_v39 }
 0x59c   : > { %4280 = vmatprep.subr.bf16.mxu0 %v4551_v21 }
 0x59e   : > { %3737 = vmatmul.mubr.msk.f32.vlgmr.msra.gmra.mrb[18].mxu0 %vm2406_vm12, %v3548_v47  ;;  %v4341_v47 = vpack.c.bf16 %v3586_v46, %v3585_v45 }
 0x59f   : > { %4282 = vmatpush3.bf16.msra.mxu0 %v4281_v50  ;;  %3759 = vmatprep.mubr.msk.f32.mxu0 %vm4553_vm9, %v4550_v7  ;;  %v3587_v50 = vld [vmem:[%s6214_s9 + $0x150] sm:$0xff] }
 0x5a0   : > { %4283 = vmatprep.subr.bf16.mxu0 %v4551_v21  ;;  %v4344_v55 = vpack.c.bf16 %v3588_v52, %v3587_v50 }
 0x5a3   : > { %4285 = vmatpush3.bf16.msra.mxu0 %v4284_v54 }
 0x5a4   : > { %4286 = vmatprep.subr.bf16.mxu0 %v4551_v21 }
 0x5a7   : > { %4288 = vmatpush3.bf16.msra.mxu0 %v4287_v49  ;;  %v4347_v49 = vpack.c.bf16 %v3590_v57, %v3589_v56  ;;  %v3094_v57 = vld [vmem:[%s6218_s13 + $0x50] sm:$0xf] }
 0x5a8   : > { %4289 = vmatprep.subr.bf16.mxu0 %v4551_v21 }
 0x5ab   : > { %4291 = vmatpush3.bf16.msra.mxu0 %v4290_v61  ;;  %v4353_v61 = vpack.c.bf16 %v3594_v60, %v3593_v59 }
 0x5ac   : > { %4292 = vmatprep.subr.bf16.mxu0 %v4551_v21 }
 0x5af   : > { %4294 = vmatpush3.bf16.msra.mxu0 %v4293_v3  ;;  %v2996_v3 = vld [vmem:[%s6216_s11 + $0x18] sm:$0xff] }
 0x5b0   : > { %4310 = vmatprep.subr.bf16.mxu0 %v4551_v21  ;;  %v4359_v4 = vpack.c.bf16 %v2996_v3, %v2995_v2 }
 0x66d   : > { %v2480_v6 = vpop.f32.mrb[16].mxu0 }
 0x66e   : > { %v3731_v8 = vpop.f32.mrb[17].mxu0 }
 0x66f   : > { %v2999_v8 = vld [vmem:[%s6216_s11 + $0x30] sm:$0xff] }
 0x671   : > { %v2555_v9 = vpop.f32.mrb[18].mxu0 }
 0x672   : > { %v2559_v10 = vmax.f32 %v2480_v6, %v2555_v9  ;;  %v3738_v11 = vpop.f32.mrb[19].mxu0  ;;  %v2998_v6 = vld [vmem:[%s6216_s11 + $0x28] sm:$0xff] }
 0x673   : > { %v4362_v9 = vpack.c.bf16 %v2998_v6, %v2997_v5 }
 0x674   : > { %2561 = vst.msk [vmem:[#allocation3] sm:$0x1f] %vm2560_vm13, %v2559_v10  ;;  %v3000_v10 = vld [vmem:[%s6216_s11 + $0x38] sm:$0xff] }
 0x675   : > { %v4365_v11 = vpack.c.bf16 %v3000_v10, %v2999_v8 }
 0x67b   : > { %v2573_v23 = vld [vmem:[#allocation3 + $0x1] sm:$0x1]  ;;  %v2562_v24 = vld [vmem:[#allocation3] sm:$0x1]  ;;  %v2732_v53 = vld [vmem:[#allocation3 + $0x2] sm:$0x1] }
 0x67c   : > { %3760 = vmatmul.mubr.msk.f32.vlgmr.msra.gmra.mrb[20].mxu0 %vm2585_vm14, %v2573_v23  ;;  %3783 = vmatmul.mubr.msk.f32.vlgmr.msra.gmra.mrb[24].mxu1 %vm2585_vm14, %v2562_v24  ;;  %v2818_v54 = vld [vmem:[#allocation3 + $0x3] sm:$0x1]  ;;  %v2904_v62 = vld [vmem:[#allocation3 + $0x4] sm:$0x1]  ;;  %v3084_v23 = vld [vmem:[%s6218_s13] sm:$0xff] }
 0x67d   : > { %4312 = vmatpush3.bf16.msra.mxu0 %v4311_v16  ;;  %4327 = vmatpush3.bf16.msra.mxu1 %v4326_v17  ;;  %v3004_v16 = vld [vmem:[%s6216_s11 + $0x58] sm:$0xff]  ;;  %v3085_v24 = vld [vmem:[%s6218_s13 + $0x8] sm:$0xff] }
 0x67e   : > { %4313 = vmatprep.subr.bf16.mxu0 %v4551_v21  ;;  %4328 = vmatprep.subr.bf16.mxu1 %v4551_v21  ;;  %v4371_v17 = vpack.c.bf16 %v3004_v16, %v3003_v15 }
 0x67f   : > { %3805 = vmatprep.mubr.msk.f32.mxu0 %vm4553_vm9, %v4550_v7  ;;  %3828 = vmatprep.mubr.msk.f32.mxu1 %vm4553_vm9, %v4550_v7 }
 0x681   : > { %4315 = vmatpush3.bf16.msra.mxu0 %v4314_v25  ;;  %4330 = vmatpush3.bf16.msra.mxu1 %v4329_v26  ;;  %v3086_v25 = vld [vmem:[%s6218_s13 + $0x10] sm:$0xff]  ;;  %v4377_v26 = vpack.c.bf16 %v3085_v24, %v3084_v23 }
 0x682   : > { %4316 = vmatprep.subr.bf16.mxu0 %v4551_v21  ;;  %4331 = vmatprep.subr.bf16.mxu1 %v4551_v21  ;;  %v4380_v28 = vpack.c.bf16 %v3087_v27, %v3086_v25 }
 0x685   : > { %4318 = vmatpush3.bf16.msra.mxu0 %v4317_v31  ;;  %4333 = vmatpush3.bf16.msra.mxu1 %v4332_v32  ;;  %v4383_v31 = vpack.c.bf16 %v3089_v30, %v3088_v29  ;;  %v3090_v32 = vld [vmem:[%s6218_s13 + $0x30] sm:$0xff] }
 0x686   : > { %4319 = vmatprep.subr.bf16.mxu0 %v4551_v21  ;;  %4334 = vmatprep.subr.bf16.mxu1 %v4551_v21  ;;  %v4386_v34 = vpack.c.bf16 %v3091_v33, %v3090_v32 }
 0x689   : > { %4321 = vmatpush3.bf16.msra.mxu0 %v4320_v37  ;;  %4336 = vmatpush3.bf16.msra.mxu1 %v4335_v38 }
 0x68a   : > { %4322 = vmatprep.subr.bf16.mxu0 %v4551_v21  ;;  %4337 = vmatprep.subr.bf16.mxu1 %v4551_v21 }
 0x68d   : > { %4324 = vmatpush3.bf16.msra.mxu0 %v4323_v43  ;;  %4339 = vmatpush3.bf16.msra.mxu1 %v4338_v44 }
 0x68e   : > { %4340 = vmatprep.subr.bf16.mxu0 %v4551_v21  ;;  %4355 = vmatprep.subr.bf16.mxu1 %v4551_v21 }
 0x690   : > { %3806 = vmatmul.mubr.msk.f32.vlgmr.msra.gmra.mrb[22].mxu0 %vm2585_vm14, %v2732_v53  ;;  %3829 = vmatmul.mubr.msk.f32.vlgmr.msra.gmra.mrb[26].mxu1 %vm2585_vm14, %v2818_v54  ;;  %v3092_v54 = vld [vmem:[%s6218_s13 + $0x40] sm:$0xff] }
 0x691   : > { %4342 = vmatpush3.bf16.msra.mxu0 %v4341_v47  ;;  %3851 = vmatprep.mubr.msk.f32.mxu0 %vm4553_vm9, %v4550_v7  ;;  %v2990_v47 = vld [vmem:[%s6215_s10] sm:$0x1] }
 0x692   : > { %4343 = vmatprep.subr.bf16.mxu0 %v4551_v21  ;;  %3884 = vmatprep.mubr.msk.f32.mxu1 %vm4553_vm9, %v4550_v7 }
 0x693   : > { %4357 = vmatpush3.bf16.msra.mxu1 %v4356_v1 }
 0x694   : > { %4358 = vmatprep.subr.bf16.mxu1 %v4551_v21 }
 0x695   : > { %4345 = vmatpush3.bf16.msra.mxu0 %v4344_v55  ;;  %v3093_v55 = vld [vmem:[%s6218_s13 + $0x48] sm:$0xff] }
 0x696   : > { %4346 = vmatprep.subr.bf16.mxu0 %v4551_v21  ;;  %v4389_v56 = vpack.c.bf16 %v3093_v55, %v3092_v54 }
 0x697   : > { %4360 = vmatpush3.bf16.msra.mxu1 %v4359_v4 }
 0x698   : > { %4361 = vmatprep.subr.bf16.mxu1 %v4551_v21 }
 0x699   : > { %4348 = vmatpush3.bf16.msra.mxu0 %v4347_v49  ;;  %v3008_v49 = vld [vmem:[%s6217_s12] sm:$0x1] }
 0x69a   : > { %4349 = vmatprep.subr.bf16.mxu0 %v4551_v21 }
 0x69b   : > { %4363 = vmatpush3.bf16.msra.mxu1 %v4362_v9 }
 0x69c   : > { %4364 = vmatprep.subr.bf16.mxu1 %v4551_v21 }
 0x69d   : > { %4351 = vmatpush3.bf16.msra.mxu0 %v4350_v58 }
 0x69e   : > { %4352 = vmatprep.subr.bf16.mxu0 %v4551_v21 }
 0x69f   : > { %4366 = vmatpush3.bf16.msra.mxu1 %v4365_v11 }
 0x6a0   : > { %4367 = vmatprep.subr.bf16.mxu1 %v4551_v21 }
 0x6a1   : > { %4354 = vmatpush3.bf16.msra.mxu0 %v4353_v61 }
 0x6a2   : > { %4376 = vmatprep.subr.bf16.mxu0 %v4551_v21 }
 0x6a3   : > { %4369 = vmatpush3.bf16.msra.mxu1 %v4368_v14 }
 0x6a4   : > { %3852 = vmatmul.mubr.msk.f32.vlgmr.msra.gmra.mrb[24].mxu0 %vm2585_vm14, %v2904_v62  ;;  %4370 = vmatprep.subr.bf16.mxu1 %v4551_v21 }
 0x6a5   : > { %3909 = vmatprep.mubr.msk.f32.mxu0 %vm4553_vm9, %v4550_v7  ;;  %4378 = vmatpush3.bf16.msra.mxu0 %v4377_v26 }
 0x6a6   : > { %4379 = vmatprep.subr.bf16.mxu0 %v4551_v21 }
 0x6a7   : > { %4372 = vmatpush3.bf16.msra.mxu1 %v4371_v17 }
 0x6a8   : > { %4373 = vmatprep.subr.bf16.mxu1 %v4551_v21 }
 0x6a9   : > { %4381 = vmatpush3.bf16.msra.mxu0 %v4380_v28 }
 0x6aa   : > { %4382 = vmatprep.subr.bf16.mxu0 %v4551_v21 }
 0x6ab   : > { %4375 = vmatpush3.bf16.msra.mxu1 %v4374_v20 }
 0x6ac   : > { %3882 = vmatprep.subr.mxu1 %v4550_v7 }
 0x6ad   : > { %4384 = vmatpush3.bf16.msra.mxu0 %v4383_v31 }
 0x6ae   : > { %4385 = vmatprep.subr.bf16.mxu0 %v4551_v21 }
 0x6af   : > { %3883 = vmatpush3.msra.mxu1 %v3007_v22 }
 0x6b1   : > { %4387 = vmatpush3.bf16.msra.mxu0 %v4386_v34 }
 0x6b2   : > { %4388 = vmatprep.subr.bf16.mxu0 %v4551_v21 }
 0x6b5   : > { %4390 = vmatpush3.bf16.msra.mxu0 %v4389_v56 }
 0x6b6   : > { %3907 = vmatprep.subr.mxu0 %v4550_v7  ;;  %v3095_v7 = vld [vmem:[%s6219_s14] sm:$0x1] }
 0x6b9   : > { %3908 = vmatpush3.msk.msra.mxu0 %vm1435_vm3, %v3094_v57 }
 0x74f   : > { %v2655_v35 = vpop.f32.mrb[20].mxu0  ;;  %v2728_v36 = vpop.f32.mrb[24].mxu1 }
 0x750   : > { %v2729_v37 = vadd.f32 %v2728_v36, %v2655_v35  ;;  %v3761_v38 = vpop.f32.mrb[21].mxu0  ;;  %v3784_v39 = vpop.f32.mrb[25].mxu1 }
 0x763   : > { %v2813_v40 = vpop.f32.mrb[22].mxu0  ;;  %v2899_v41 = vpop.f32.mrb[26].mxu1 }
 0x764   : > { %v2817_v42 = vadd.f32 %v2813_v40, %v2729_v37  ;;  %v3807_v43 = vpop.f32.mrb[23].mxu0  ;;  %v3830_v44 = vpop.f32.mrb[27].mxu1 }
 0x766   : > { %v2903_v45 = vadd.f32 %v2899_v41, %v2817_v42 }
 0x777   : > { %v2985_v46 = vpop.f32.mrb[24].mxu0 }
 0x778   : > { %v2989_v50 = vadd.f32 %v2985_v46, %v2903_v45  ;;  %v3853_v52 = vpop.f32.mrb[25].mxu0 }
 0x77a   : > { %v2991_v53 = vadd.f32 %v2990_v47, %v2989_v50 }
 0x77c   : > { %v2992_v21 = vmax.f32 %v2991_v53, 0.0 }
 0x77e   : > { %3885 = vmatmul.mubr.msk.f32.vlgmr.msra.gmra.mrb[28].mxu1 %vm3009_vm15, %v2992_v21 }
 0x851   : > { %v3079_v48 = vpop.f32.mrb[28].mxu1 }
 0x852   : > { %v3080_v51 = vadd.f32 %v3079_v48, %v3008_v49  ;;  %v3886_v58 = vpop.f32.mrb[29].mxu1 }
 0x854   : > { %v3083_v59 = vmax.f32 %v3080_v51, 0.0 }
 0x856   : > { %3910 = vmatmul.mubr.msk.f32.vlgmr.msra.gmra.mrb[26].mxu0 %vm1600_vm7, %v3083_v59 }
 0x929   : > { %v3168_v60 = vpop.f32.mrb[26].mxu0 }
 0x92a   : > { %v3169_v61 = vadd.f32 %v3168_v60, %v3095_v7  ;;  %v3911_v62 = vpop.f32.mrb[27].mxu0 }
 0x92c   : > { %v3173_v63 = vsel %vm3172_vm0, %v3169_v61, -inf }
 0x92d   : > { %3174 = vmax.xlane.f32.xlu0 %v3173_v63 }
 0x9ba   : > { %v3175_v0 = vpop.xlane.xlu0 %3174 }
 0x9bb   : > { %v3176_v1 = vsub.f32 %v3169_v61, %v3175_v0 }
 0x9bd   : > { %v3177_v2 = vmul.f32 1.442695, %v3176_v1 }
 0x9bf   : > { %4482 = vpow2.f32 %v3177_v2 }
 0x9c9   : > { %v4483_v3 = vpop.eup %4482 }
 0x9ca   : > { %v3179_v4 = vsel %vm3172_vm0, %v4483_v3, 0.0 }
 0x9cb   : > { %3180 = vadd.xlane.f32.xlu0 %v3179_v4 }
 0xa58   : > { %v3181_v5 = vpop.xlane.xlu0 %3180 }
 0xa59   : > { %4484 = vlog2.f32 %v3181_v5 }
 0xa63   : > { %v4485_v6 = vpop.eup %4484 }
 0xa64   : > { %v3183_v8 = vmul.f32 0.6931472, %v4485_v6 }
 0xa66   : > { %v3184_v9 = vadd.f32 %v3183_v8, %v3175_v0 }
 0xa68   : > { %v3185_v10 = vsub.f32 %v3169_v61, %v3184_v9 }
 0xa6a   : > { %3186 = vst.msk [vmem:[%s487_s23] sm:$0x1] %vm3172_vm0, %v3185_v10 }
 0xa6b   : > { %4499 = shalt.err (!%p4496_p3)
}
 0xa6c   : > { %s4500_s27 = scalar_lea.hbm %s6162_s26, 16  ;;  %s4504_s21 = scalar_lea.hbm %s6220_s15, 32 }
 0xa6d   : > { %p4501_p4 = scmp.ne.s32.totalorder %s6162_s26, %s4500_s27  ;;  %p4505_p9 = scmp.lt.u32.totalorder %s6162_s26, %s6220_s15 }
 0xa6e   : > { %p4506_p10 = scmp.lt.u32.totalorder %s4504_s21, %s4500_s27  ;;  %p4508_p12 = scmp.lt.u32.totalorder %s4500_s27, %s6162_s26 }
 0xa6f   : > { %p4502_p7 = pnand %p4501_p4, %p4673_p5 }
 0xa70   : > { %p4507_p11 = por %p4506_p10, %p4505_p9 }
 0xa71   : > { %p4503_p8 = pneg %p4502_p7 }
 0xa72   : > { %p4509_p13 = por %p4508_p12, %p4507_p11 }
 0xa74   : > { %p4510_p0 = pnand %p4509_p13, %p4503_p8 }
 0xa76   : > { %4513 = shalt.err (!%p4510_p0)
}
 0xa77   : > { %4439 = dma.vmem_to_hbm [thread:$0]  (%p4673_p5), %s6164_s25, 16, %s6162_s26, %s3188_s30  }
 0xa78 PF: > { %s6239_s29 = sld [smem:[#allocation9_spill]]  ;;  %s6240_s16 = sld [smem:[#allocation7_spill]] }
 0xa7e   : > { %p4445_p1 = scmp.ge.s32.totalorder %s6239_s29, 2  ;;  %s3212_s0 = sand.u32 1, %s6240_s16  }
 0xa7f   : > { %s3213_s17 = scalar_lea.sflag [#allocation5], %s3212_s0 }
 0xa80   : > { %p4442_p2 = pnand %p4445_p1, %p4677_p6 }
 0xa82   : > { %4531 = dma.done.wait (!%p4442_p2), %s3213_s17, 16  }
 0xa83   : > { %4533 = vsyncadd (!%p4442_p2), %s3213_s17, 4294967280  ;;  %s6242_s21 = sld [smem:[#allocation10_spill]]  ;;  %s6243_s27 = sld [smem:[#allocation8_spill]] }
 0xa84   : > { %s6244_s20 = sld [smem:[#allocation11_spill]]  ;;  %s6245_s18 = smov %s4540_s19 }
 0xa89   : > { %p25_p3 = scmp.ge.s32.totalorder %s6242_s21, 4   ;;  %s6246_s19 = smov %s6243_s27 }
 0xa8b   :  { %27 = sbr.rel (!%p25_p3) target bundleno = 5 (0x5), region = 131 }
 0xa92   :  { %3217 = vsyncpa [#allocation5], 1 }
 0xa93   :  { %3219 = vsyncpa [#allocation5 + $0x1], 1 }

</bundles_post_ra>
